<compile_context>
chip_gen: v7x
topology: tpu7x:2x2x1
jax: 0.10.0
libtpu: 0.0.40
codegen_flags: <defaults>
</compile_context>

<pallas_src>
import functools

import numpy as np
import jax
import jax.numpy as jnp
from jax import lax
from jax.experimental import pallas as pl
from jax.experimental.pallas import tpu as pltpu


# ---------------------------------------------------------------------------
# Fused Pallas kernel
# ---------------------------------------------------------------------------

def _rfb_fused_kernel(x_ref, m_ref, wf_ref, wm_ref, bm_ref, wd_ref,
                      shift_ref, w1_ref, b1_ref, w3_ref, b3_ref,
                      y_ref, up_ref, *, sizes, H, W, use_mask, cast_taps_early):
    HW = H * W
    mp = max(max(s // 2 for s in sizes), 1)
    K = 2 * mp + 1
    C = x_ref.shape[1]
    mm = w1_ref.dtype                          # MXU operand dtype (f32 / bf16)
    slab_dt = mm if cast_taps_early else jnp.float32

    masks32 = m_ref[...]                       # (K*K, HW) combined validity
    masks_s = masks32.astype(slab_dt)

    def midx(di, dj):
        return (di + mp) * K + (dj + mp)

    def mrow(di, dj):
        t = midx(di, dj)
        return masks32[t:t + 1, :]

    def shift_pix(v, di, dj):
        # out[:, i*W+j] = v[:, (i+di)*W + (j+dj)]   (wrapped; masked by caller)
        s = di * W + dj
        if s == 0:
            return v
        return pltpu.roll(v, shift=(-s) % HW, axis=1)

    def tap(v, di, dj, masks):
        # zero outside the HxW image
        r = shift_pix(v, di, dj)
        if di == 0 and dj == 0:
            return r
        t = midx(di, dj)
        return r * masks[t:t + 1, :]

    # ---- stage 1: shared unique im2col taps, ONE fused branch matmul,
    #      per-branch BN/ReLU (folded) + 1x1 conv + BN + ReLU ----------------
    x = x_ref[0].astype(slab_dt)               # (C, HW)
    taps = {(di, dj): tap(x, di, dj, masks_s)
            for di in range(-mp, mp + 1) for dj in range(-mp, mp + 1)}
    uniq = jnp.concatenate(
        [taps[(di, dj)] for di in range(-mp, mp + 1) for dj in range(-mp, mp + 1)],
        axis=0)                                # (K*K*C, HW)

    if not use_mask:
        # zero offsets + sigmoid(0)=0.5 modulation folded into the block-
        # structured weight; output rows are already the concatenated branches.
        ycat = jnp.dot(wf_ref[...], uniq.astype(mm),
                       preferred_element_type=jnp.float32)            # (C, HW)
    else:
        # fused mask-conv logits for all branches from the unique-tap slab.
        logits = jnp.dot(wm_ref[...], uniq.astype(mm),
                         preferred_element_type=jnp.float32) + bm_ref[...]
        mod = jax.nn.sigmoid(logits).astype(slab_dt)                   # (sum kk, HW)
        mslabs = []
        row = 0
        for k in sizes:
            p = k // 2
            for kh in range(k):
                for kw in range(k):
                    mslabs.append(taps[(kh - p, kw - p)] * mod[row:row + 1, :])
                    row += 1
        mstk = jnp.concatenate(mslabs, axis=0)                         # (sum kk*C, HW)
        ycat = jnp.dot(wd_ref[...], mstk.astype(mm),
                       preferred_element_type=jnp.float32)             # (C, HW)

    ypre = jnp.maximum(ycat + shift_ref[...], 0.0)
    y = jnp.dot(w1_ref[...], ypre.astype(mm),
                preferred_element_type=jnp.float32) + b1_ref[...]
    y = jnp.maximum(y, 0.0)                                            # (C, HW)
    y_ref[...] = y[None].astype(y_ref.dtype)

    # ---- stage 2: 2x bilinear upsample (align_corners=False) as 4 phases,
    #      all four phase 3x3 convs batched into ONE lane-wide matmul --------
    i_ok_up, i_ok_dn = mrow(-1, 0), mrow(+1, 0)     # row i-1 / i+1 in range
    j_ok_l, j_ok_r = mrow(0, -1), mrow(0, +1)       # col j-1 / j+1 in range

    row_up = shift_pix(y, -1, 0) * i_ok_up + (1.0 - i_ok_up) * y   # y[max(i-1,0), j]
    row_dn = shift_pix(y, +1, 0) * i_ok_dn + (1.0 - i_ok_dn) * y   # y[min(i+1,H-1), j]
    r_e = 0.25 * row_up + 0.75 * y                                 # even output rows
    r_o = 0.75 * y + 0.25 * row_dn                                 # odd output rows

    def col_phases(r):
        left = shift_pix(r, 0, -1) * j_ok_l + (1.0 - j_ok_l) * r   # r[i, max(j-1,0)]
        right = shift_pix(r, 0, +1) * j_ok_r + (1.0 - j_ok_r) * r  # r[i, min(j+1,W-1)]
        return 0.25 * left + 0.75 * r, 0.75 * r + 0.25 * right

    ee, eo = col_phases(r_e)
    oe, oo = col_phases(r_o)
    U = ((ee, eo), (oe, oo))        # U[p][q][c, i*W+j] = y_up[c, 2i+p, 2j+q]

    phase_slabs = []
    for pp in range(2):
        for qq in range(2):
            slabs = []
            for a in range(3):
                dr = pp + a - 1          # static Python ints: floor div below
                for b in range(3):
                    dc = qq + b - 1
                    slabs.append(tap(U[dr % 2][dc % 2], dr // 2, dc // 2, masks32))
            phase_slabs.append(jnp.concatenate(slabs, axis=0))          # (9C, HW)
    big = jnp.concatenate(phase_slabs, axis=1)                          # (9C, 4*HW)
    out = jnp.dot(w3_ref[...], big.astype(mm),
                  preferred_element_type=jnp.float32) + b3_ref[...]
    up_ref[...] = jnp.maximum(out, 0.0)[None].astype(up_ref.dtype)      # lane-dense


# ---------------------------------------------------------------------------
# Wrapper
# ---------------------------------------------------------------------------

def _make_masks(H, W, mp):
    """Combined row+column validity masks for every (di, dj), shape (K*K, HW)."""
    ii = np.arange(H * W) // W
    jj = np.arange(H * W) % W
    rows = []
    for di in range(-mp, mp + 1):
        rok = (ii + di >= 0) & (ii + di < H)
        for dj in range(-mp, mp + 1):
            cok = (jj + dj >= 0) & (jj + dj < W)
            rows.append((rok & cok).astype(np.float32))
    return jnp.asarray(np.stack(rows, axis=0))


def _fold_params(params, C, sizes, mp, mm_dtype, use_mask):
    """Fold conv bias + BN(eval) (+ the 0.5 modulation) into fused matmul weights."""
    nb = len(sizes)
    Cq = C // nb
    Skk = sum(k * k for k in sizes)
    f32 = jnp.float32

    wf_rows, wm_rows, bm_rows, wd_rows, shifts = [], [], [], [], []
    for bi, br in enumerate(params["branches"]):
        k = int(br["k"]); p = k // 2; kk = k * k
        sc = br["bn_scale"].reshape(-1)
        shifts.append(br["bn_shift"].reshape(-1))
        w = br["w_dcn"]                                      # (k,k,Cin,Cq) HWIO
        fold = sc if use_mask else 0.5 * sc                  # sigmoid(0)=0.5 folded
        blocks, mblocks = [], []
        for di in range(-mp, mp + 1):
            for dj in range(-mp, mp + 1):
                kh, kw = di + p, dj + p
                inside = (0 <= kh < k) and (0 <= kw < k)
                blocks.append(jnp.transpose(w[kh, kw]) * fold[:, None]
                              if inside else jnp.zeros((Cq, C), f32))
                if use_mask:
                    mblocks.append(jnp.transpose(br["w_mask"][kh, kw])
                                   if inside else jnp.zeros((kk, C), f32))
        wf_rows.append(jnp.concatenate(blocks, axis=1))       # (Cq, K*K*C)
        if use_mask:
            wm_rows.append(jnp.concatenate(mblocks, axis=1))  # (kk, K*K*C)
            bm_rows.append(br["b_mask"].reshape(kk, 1))
            wd_rows.append(jnp.concatenate(
                [jnp.transpose(w[kh, kw]) * sc[:, None]
                 for kh in range(k) for kw in range(k)], axis=1))   # (Cq, kk*C)

    shift_br = jnp.concatenate(shifts).reshape(C, 1)
    dummy = jnp.zeros((1, 1), f32)

    if use_mask:
        wf = dummy
        wm = jnp.concatenate(wm_rows, axis=0).astype(mm_dtype)        # (Skk, K*K*C)
        bm = jnp.concatenate(bm_rows, axis=0)                         # (Skk, 1)
        offs = np.cumsum([0] + [k * k for k in sizes])
        full_rows = []
        for bi, k in enumerate(sizes):
            kk = k * k
            parts = []
            if int(offs[bi]) > 0:
                parts.append(jnp.zeros((Cq, int(offs[bi]) * C), f32))
            parts.append(wd_rows[bi])
            tail = int(Skk - offs[bi] - kk)
            if tail > 0:
                parts.append(jnp.zeros((Cq, tail * C), f32))
            full_rows.append(jnp.concatenate(parts, axis=1))
        wd = jnp.concatenate(full_rows, axis=0).astype(mm_dtype)      # (C, Skk*C)
    else:
        wf = jnp.concatenate(wf_rows, axis=0).astype(mm_dtype)        # (C, K*K*C)
        wm, bm, wd = dummy, dummy, dummy

    s1 = params["bn1_scale"].reshape(-1); sh1 = params["bn1_shift"].reshape(-1)
    w1m = (jnp.transpose(params["w1"][0, 0]) * s1[:, None]).astype(mm_dtype)
    b1e = (params["b1"].reshape(-1) * s1 + sh1).reshape(C, 1)

    s2 = params["bn2_scale"].reshape(-1); sh2 = params["bn2_shift"].reshape(-1)
    w3m = (jnp.transpose(params["w_up"], (3, 0, 1, 2)).reshape(C, 9 * C)
           * s2[:, None]).astype(mm_dtype)
    b3e = (params["b_up"].reshape(-1) * s2 + sh2).reshape(C, 1)

    return wf, wm, bm, wd, shift_br, w1m, b1e, w3m, b3e


def rfb_forward(x_nchw, params, *, assume_zero_offset_conv=True,
                mm_dtype=jnp.float32, cast_taps_early=None):
    """x_nchw: (N, C, H, W).  Returns (y, y_up) in NCHW like the PyTorch module.

    mm_dtype: MXU operand dtype (pass jnp.bfloat16 on v6e/v7x for speed).
    cast_taps_early: build the im2col slab directly in mm_dtype (recommended on
      v6e/v7x; keep False on v5e which has no bf16 VALU).  Defaults to
      (mm_dtype != float32).
    """
    N, C, H, W = x_nchw.shape
    sizes = tuple(int(br["k"]) for br in params["branches"])
    HW = H * W
    mp = max(max(s // 2 for s in sizes), 1)
    use_mask = not assume_zero_offset_conv
    if cast_taps_early is None:
        cast_taps_early = (mm_dtype != jnp.float32)

    x2 = x_nchw.reshape(N, C, HW)               # flattened NCHW: free reshape
    masks = _make_masks(H, W, mp)
    folded = _fold_params(params, C, sizes, mp, mm_dtype, use_mask)

    kernel = functools.partial(_rfb_fused_kernel, sizes=sizes, H=H, W=W,
                               use_mask=use_mask, cast_taps_early=cast_taps_early)

    def full(a):
        nd = a.ndim
        return pl.BlockSpec(a.shape, lambda n, _nd=nd: (0,) * _nd)

    in_arrays = [x2, masks, *folded]
    in_specs = ([pl.BlockSpec((1, C, HW), lambda n: (n, 0, 0))]
                + [full(a) for a in in_arrays[1:]])

    # Scoped-VMEM request: generous for the in-kernel slabs (v7x default is
    # 32 MiB scoped, 64 MiB physical).
    T = (2 * mp + 1) ** 2
    Skk = sum(k * k for k in sizes)
    est = 4 * HW * C * (2 * T + 2 * Skk + 96)
    vmem_limit = int(min(max(est, 32 * 1024 * 1024), 48 * 1024 * 1024))

    y2, up4 = pl.pallas_call(
        kernel,
        out_shape=(jax.ShapeDtypeStruct((N, C, HW), x_nchw.dtype),
                   jax.ShapeDtypeStruct((N, C, 4 * HW), x_nchw.dtype)),
        grid=(N,),
        in_specs=in_specs,
        out_specs=(pl.BlockSpec((1, C, HW), lambda n: (n, 0, 0)),
                   pl.BlockSpec((1, C, 4 * HW), lambda n: (n, 0, 0))),
        compiler_params=pltpu.CompilerParams(
            dimension_semantics=("parallel",),
            vmem_limit_bytes=vmem_limit),
    )(*in_arrays)

    y_nchw = y2.reshape(N, C, H, W)                         # free reshape
    # up4[n, c, (2p+q)*HW + i*W + j] == y_up[n, c, 2i+p, 2j+q]
    # TODO(synk): for large H*W, interleave even/odd phases in-kernel and emit
    # (N, C, 2H, 2W) directly to avoid this wrapper-side transpose copy.
    up = up4.reshape(N, C, 2, 2, H, W)
    up_nchw = jnp.transpose(up, (0, 1, 4, 2, 5, 3)).reshape(N, C, 2 * H, 2 * W)
    return y_nchw, up_nchw


# ---------------------------------------------------------------------------
# Parameters (deterministic synthetic init matching the module's __init__)
# ---------------------------------------------------------------------------

def _bn_affine(key, c):
    k1, k2, k3, k4 = jax.random.split(key, 4)
    gamma = 1.0 + 0.1 * jax.random.normal(k1, (c,), jnp.float32)
    beta = 0.1 * jax.random.normal(k2, (c,), jnp.float32)
    rmean = 0.1 * jax.random.normal(k3, (c,), jnp.float32)
    rvar = 1.0 + 0.1 * jnp.abs(jax.random.normal(k4, (c,), jnp.float32))
    scale = gamma * lax.rsqrt(rvar + 1e-5)
    shift = beta - rmean * scale
    return scale.reshape(1, c), shift.reshape(1, c)


def init_rfb_params(key, C, sizelist=(1, 3, 5, 7)):
    Cq = C // len(sizelist)
    branches = []
    for ks in sizelist:
        key, kd, kb = jax.random.split(key, 3)
        kk = ks * ks
        # dcn_offset weight & bias zero-initialized (per init_weights).
        w_mask = jnp.zeros((ks, ks, C, kk), jnp.float32)
        b_mask = jnp.zeros((1, kk), jnp.float32)
        fan_out = Cq * kk
        w_dcn = jax.random.normal(kd, (ks, ks, C, Cq), jnp.float32) * (2.0 / fan_out) ** 0.5
        scale, shift = _bn_affine(kb, Cq)
        branches.append(dict(k=ks, w_mask=w_mask, b_mask=b_mask, w_dcn=w_dcn,
                             bn_scale=scale, bn_shift=shift))
    key, k1, k2, k3, k4, k5, k6 = jax.random.split(key, 7)
    w1 = jax.random.normal(k1, (1, 1, C, C), jnp.float32) * (1.0 / C) ** 0.5
    b1 = 0.1 * jax.random.normal(k2, (1, C), jnp.float32)
    bn1_scale, bn1_shift = _bn_affine(k3, C)
    w_up = jax.random.normal(k4, (3, 3, C, C), jnp.float32) * (1.0 / (9 * C)) ** 0.5
    b_up = 0.1 * jax.random.normal(k5, (1, C), jnp.float32)
    bn2_scale, bn2_shift = _bn_affine(k6, C)
    return dict(branches=branches, w1=w1, b1=b1, bn1_scale=bn1_scale,
                bn1_shift=bn1_shift, w_up=w_up, b_up=b_up,
                bn2_scale=bn2_scale, bn2_shift=bn2_shift)


# ---------------------------------------------------------------------------
# Pure-JAX reference (sanity check of the Pallas lowering)
# ---------------------------------------------------------------------------

def _ref_conv(x, w):
    return lax.conv_general_dilated(x, w, (1, 1), "SAME",
                                    dimension_numbers=("NHWC", "HWIO", "NHWC"))


def ref_forward(x_nchw, params):
    x = jnp.transpose(x_nchw, (0, 2, 3, 1))
    N, H, W, C = x.shape
    outs = []
    for br in params["branches"]:
        k = br["k"]; kk = k * k; pad = k // 2
        m = jax.nn.sigmoid(_ref_conv(x, br["w_mask"]) + br["b_mask"].reshape(1, 1, 1, kk))
        xp = jnp.pad(x, ((0, 0), (pad, pad), (pad, pad), (0, 0)))
        acc = 0.0
        for kh in range(k):
            for kw in range(k):
                tap = jnp.einsum("nhwc,co->nhwo", xp[:, kh:kh + H, kw:kw + W, :],
                                 br["w_dcn"][kh, kw])
                t = kh * k + kw
                acc = acc + m[..., t:t + 1] * tap
        out = acc * br["bn_scale"].reshape(1, 1, 1, -1) + br["bn_shift"].reshape(1, 1, 1, -1)
        outs.append(jnp.maximum(out, 0.0))
    y = jnp.concatenate(outs, axis=-1)
    y = jnp.maximum((_ref_conv(y, params["w1"]) + params["b1"].reshape(1, 1, 1, -1))
                    * params["bn1_scale"].reshape(1, 1, 1, -1)
                    + params["bn1_shift"].reshape(1, 1, 1, -1), 0.0)

    def up2(v):
        n, h, w, c = v.shape

        def idx(out_len, in_len):
            d = jnp.arange(out_len, dtype=jnp.float32)
            src = jnp.maximum((d + 0.5) * (in_len / out_len) - 0.5, 0.0)
            i0 = jnp.floor(src).astype(jnp.int32)
            i1 = jnp.minimum(i0 + 1, in_len - 1)
            lam = src - i0.astype(jnp.float32)
            return i0, i1, lam

        i0, i1, lh = idx(2 * h, h)
        j0, j1, lw = idx(2 * w, w)
        r = v[:, i0] * (1 - lh)[None, :, None, None] + v[:, i1] * lh[None, :, None, None]
        return (r[:, :, j0] * (1 - lw)[None, None, :, None]
                + r[:, :, j1] * lw[None, None, :, None])

    y_up = up2(y)
    y_up = jnp.maximum((_ref_conv(y_up, params["w_up"]) + params["b_up"].reshape(1, 1, 1, -1))
                       * params["bn2_scale"].reshape(1, 1, 1, -1)
                       + params["bn2_shift"].reshape(1, 1, 1, -1), 0.0)
    return jnp.transpose(y, (0, 3, 1, 2)), jnp.transpose(y_up, (0, 3, 1, 2))


# ---------------------------------------------------------------------------

if __name__ == "__main__":
    key = jax.random.PRNGKey(0)
    N, C, H, W = 2, 8, 16, 16               # inter_channels=8 (divisible by 4)
    kx, kp = jax.random.split(key)
    x = jax.random.normal(kx, (N, C, H, W), jnp.float32)
    params = init_rfb_params(kp, C)

    # 1) fast path: matches the module's zero-initialized dcn_offset.
    y, y_up = rfb_forward(x, params)
    jax.block_until_ready((y, y_up))
    assert y.shape == (N, C, H, W)
    assert y_up.shape == (N, C, 2 * H, 2 * W)

    y_ref, y_up_ref = ref_forward(x, params)
    assert float(jnp.max(jnp.abs(y - y_ref))) < 2e-3
    assert float(jnp.max(jnp.abs(y_up - y_up_ref))) < 2e-3

    # 2) general modulation-mask path (non-zero dcn_offset mask weights).
    key2 = jax.random.PRNGKey(1)
    branches_m = []
    for br in params["branches"]:
        k = br["k"]; kk = k * k
        key2, ka, kb = jax.random.split(key2, 3)
        br2 = dict(br)
        br2["w_mask"] = 0.1 * jax.random.normal(ka, (k, k, C, kk), jnp.float32)
        br2["b_mask"] = 0.1 * jax.random.normal(kb, (1, kk), jnp.float32)
        branches_m.append(br2)
    params_m = dict(params)
    params_m["branches"] = branches_m
    ym, ym_up = rfb_forward(x, params_m, assume_zero_offset_conv=False)
    jax.block_until_ready((ym, ym_up))
    ym_ref, ym_up_ref = ref_forward(x, params_m)
    assert float(jnp.max(jnp.abs(ym - ym_ref))) < 2e-3
    assert float(jnp.max(jnp.abs(ym_up - ym_up_ref))) < 2e-3

    # 3) bf16 MXU-operand path with bf16 slab build (v6e/v7x optimization);
    #    relative-style tolerance per review.
    yb, yb_up = rfb_forward(x, params, mm_dtype=jnp.bfloat16)
    jax.block_until_ready((yb, yb_up))
    tol_y = 0.05 + 0.08 * float(jnp.max(jnp.abs(y_ref)))
    tol_u = 0.05 + 0.08 * float(jnp.max(jnp.abs(y_up_ref)))
    assert float(jnp.max(jnp.abs(yb - y_ref))) < tol_y
    assert float(jnp.max(jnp.abs(yb_up - y_up_ref))) < tol_u

    print("KERNEL_OK")
</pallas_src>

<mosaic_0001>
module attributes {stable_mosaic.version = 11 : i64} {
  func.func @_rfb_fused_kernel(%arg0: i32, %arg1: memref<1x8x256xf32, #tpu.memory_space<vmem>>, %arg2: memref<49x256xf32, #tpu.memory_space<vmem>>, %arg3: memref<8x392xf32, #tpu.memory_space<vmem>>, %arg4: memref<1x1xf32, #tpu.memory_space<vmem>>, %arg5: memref<1x1xf32, #tpu.memory_space<vmem>>, %arg6: memref<1x1xf32, #tpu.memory_space<vmem>>, %arg7: memref<8x1xf32, #tpu.memory_space<vmem>>, %arg8: memref<8x8xf32, #tpu.memory_space<vmem>>, %arg9: memref<8x1xf32, #tpu.memory_space<vmem>>, %arg10: memref<8x72xf32, #tpu.memory_space<vmem>>, %arg11: memref<8x1xf32, #tpu.memory_space<vmem>>, %arg12: memref<1x8x256xf32, #tpu.memory_space<vmem>>, %arg13: memref<1x8x1024xf32, #tpu.memory_space<vmem>>) attributes {dimension_semantics = [#tpu.dimension_semantics<parallel>], iteration_bounds = array<i64: 2>, scalar_prefetch = 0 : i64, scratch_operands = 0 : i64, tpu.core_type = #tpu.core_type<tc>, window_params = [{transform_indices = @transform_0, window_bounds = array<i64: 1, 8, 256>}, {pipeline_mode = #tpu.pipeline_mode<synchronous>, transform_indices = @transform_1, window_bounds = array<i64: 49, 256>}, {pipeline_mode = #tpu.pipeline_mode<synchronous>, transform_indices = @transform_2, window_bounds = array<i64: 8, 392>}, {pipeline_mode = #tpu.pipeline_mode<synchronous>, transform_indices = @transform_3, window_bounds = array<i64: 1, 1>}, {pipeline_mode = #tpu.pipeline_mode<synchronous>, transform_indices = @transform_4, window_bounds = array<i64: 1, 1>}, {pipeline_mode = #tpu.pipeline_mode<synchronous>, transform_indices = @transform_5, window_bounds = array<i64: 1, 1>}, {pipeline_mode = #tpu.pipeline_mode<synchronous>, transform_indices = @transform_6, window_bounds = array<i64: 8, 1>}, {pipeline_mode = #tpu.pipeline_mode<synchronous>, transform_indices = @transform_7, window_bounds = array<i64: 8, 8>}, {pipeline_mode = #tpu.pipeline_mode<synchronous>, transform_indices = @transform_8, window_bounds = array<i64: 8, 1>}, {pipeline_mode = #tpu.pipeline_mode<synchronous>, transform_indices = @transform_9, window_bounds = array<i64: 8, 72>}, {pipeline_mode = #tpu.pipeline_mode<synchronous>, transform_indices = @transform_10, window_bounds = array<i64: 8, 1>}, {transform_indices = @transform_11, window_bounds = array<i64: 1, 8, 256>}, {transform_indices = @transform_12, window_bounds = array<i64: 1, 8, 1024>}]} {
    %c0 = arith.constant 0 : index
    %c0_0 = arith.constant 0 : index
    %0 = vector.load %arg2[%c0, %c0_0] : memref<49x256xf32, #tpu.memory_space<vmem>>, vector<49x256xf32>
    %c0_1 = arith.constant 0 : index
    %c0_2 = arith.constant 0 : index
    %c0_3 = arith.constant 0 : index
    %1 = vector.load %arg1[%c0_1, %c0_2, %c0_3] : memref<1x8x256xf32, #tpu.memory_space<vmem>>, vector<1x8x256xf32>
    %2 = vector.shape_cast %1 : vector<1x8x256xf32> to vector<8x256xf32>
    %c51_i32 = arith.constant 51 : i32
    %3 = tpu.dynamic_rotate %2 by %c51_i32 dim 1 : vector<8x256xf32>, i32 -> vector<8x256xf32>
    %4 = vector.extract_strided_slice %0 {offsets = [0, 0], sizes = [1, 256], strides = [1, 1]} : vector<49x256xf32> to vector<1x256xf32>
    %5 = vector.broadcast %4 : vector<1x256xf32> to vector<8x256xf32>
    %6 = arith.mulf %3, %5 : vector<8x256xf32>
    %c50_i32 = arith.constant 50 : i32
    %7 = tpu.dynamic_rotate %2 by %c50_i32 dim 1 : vector<8x256xf32>, i32 -> vector<8x256xf32>
    %8 = vector.extract_strided_slice %0 {offsets = [1, 0], sizes = [1, 256], strides = [1, 1]} : vector<49x256xf32> to vector<1x256xf32>
    %9 = vector.broadcast %8 : vector<1x256xf32> to vector<8x256xf32>
    %10 = arith.mulf %7, %9 : vector<8x256xf32>
    %c49_i32 = arith.constant 49 : i32
    %11 = tpu.dynamic_rotate %2 by %c49_i32 dim 1 : vector<8x256xf32>, i32 -> vector<8x256xf32>
    %12 = vector.extract_strided_slice %0 {offsets = [2, 0], sizes = [1, 256], strides = [1, 1]} : vector<49x256xf32> to vector<1x256xf32>
    %13 = vector.broadcast %12 : vector<1x256xf32> to vector<8x256xf32>
    %14 = arith.mulf %11, %13 : vector<8x256xf32>
    %c48_i32 = arith.constant 48 : i32
    %15 = tpu.dynamic_rotate %2 by %c48_i32 dim 1 : vector<8x256xf32>, i32 -> vector<8x256xf32>
    %16 = vector.extract_strided_slice %0 {offsets = [3, 0], sizes = [1, 256], strides = [1, 1]} : vector<49x256xf32> to vector<1x256xf32>
    %17 = vector.broadcast %16 : vector<1x256xf32> to vector<8x256xf32>
    %18 = arith.mulf %15, %17 : vector<8x256xf32>
    %c47_i32 = arith.constant 47 : i32
    %19 = tpu.dynamic_rotate %2 by %c47_i32 dim 1 : vector<8x256xf32>, i32 -> vector<8x256xf32>
    %20 = vector.extract_strided_slice %0 {offsets = [4, 0], sizes = [1, 256], strides = [1, 1]} : vector<49x256xf32> to vector<1x256xf32>
    %21 = vector.broadcast %20 : vector<1x256xf32> to vector<8x256xf32>
    %22 = arith.mulf %19, %21 : vector<8x256xf32>
    %c46_i32 = arith.constant 46 : i32
    %23 = tpu.dynamic_rotate %2 by %c46_i32 dim 1 : vector<8x256xf32>, i32 -> vector<8x256xf32>
    %24 = vector.extract_strided_slice %0 {offsets = [5, 0], sizes = [1, 256], strides = [1, 1]} : vector<49x256xf32> to vector<1x256xf32>
    %25 = vector.broadcast %24 : vector<1x256xf32> to vector<8x256xf32>
    %26 = arith.mulf %23, %25 : vector<8x256xf32>
    %c45_i32 = arith.constant 45 : i32
    %27 = tpu.dynamic_rotate %2 by %c45_i32 dim 1 : vector<8x256xf32>, i32 -> vector<8x256xf32>
    %28 = vector.extract_strided_slice %0 {offsets = [6, 0], sizes = [1, 256], strides = [1, 1]} : vector<49x256xf32> to vector<1x256xf32>
    %29 = vector.broadcast %28 : vector<1x256xf32> to vector<8x256xf32>
    %30 = arith.mulf %27, %29 : vector<8x256xf32>
    %c35_i32 = arith.constant 35 : i32
    %31 = tpu.dynamic_rotate %2 by %c35_i32 dim 1 : vector<8x256xf32>, i32 -> vector<8x256xf32>
    %32 = vector.extract_strided_slice %0 {offsets = [7, 0], sizes = [1, 256], strides = [1, 1]} : vector<49x256xf32> to vector<1x256xf32>
    %33 = vector.broadcast %32 : vector<1x256xf32> to vector<8x256xf32>
    %34 = arith.mulf %31, %33 : vector<8x256xf32>
    %c34_i32 = arith.constant 34 : i32
    %35 = tpu.dynamic_rotate %2 by %c34_i32 dim 1 : vector<8x256xf32>, i32 -> vector<8x256xf32>
    %36 = vector.extract_strided_slice %0 {offsets = [8, 0], sizes = [1, 256], strides = [1, 1]} : vector<49x256xf32> to vector<1x256xf32>
    %37 = vector.broadcast %36 : vector<1x256xf32> to vector<8x256xf32>
    %38 = arith.mulf %35, %37 : vector<8x256xf32>
    %c33_i32 = arith.constant 33 : i32
    %39 = tpu.dynamic_rotate %2 by %c33_i32 dim 1 : vector<8x256xf32>, i32 -> vector<8x256xf32>
    %40 = vector.extract_strided_slice %0 {offsets = [9, 0], sizes = [1, 256], strides = [1, 1]} : vector<49x256xf32> to vector<1x256xf32>
    %41 = vector.broadcast %40 : vector<1x256xf32> to vector<8x256xf32>
    %42 = arith.mulf %39, %41 : vector<8x256xf32>
    %c32_i32 = arith.constant 32 : i32
    %43 = tpu.dynamic_rotate %2 by %c32_i32 dim 1 : vector<8x256xf32>, i32 -> vector<8x256xf32>
    %44 = vector.extract_strided_slice %0 {offsets = [10, 0], sizes = [1, 256], strides = [1, 1]} : vector<49x256xf32> to vector<1x256xf32>
    %45 = vector.broadcast %44 : vector<1x256xf32> to vector<8x256xf32>
    %46 = arith.mulf %43, %45 : vector<8x256xf32>
    %c31_i32 = arith.constant 31 : i32
    %47 = tpu.dynamic_rotate %2 by %c31_i32 dim 1 : vector<8x256xf32>, i32 -> vector<8x256xf32>
    %48 = vector.extract_strided_slice %0 {offsets = [11, 0], sizes = [1, 256], strides = [1, 1]} : vector<49x256xf32> to vector<1x256xf32>
    %49 = vector.broadcast %48 : vector<1x256xf32> to vector<8x256xf32>
    %50 = arith.mulf %47, %49 : vector<8x256xf32>
    %c30_i32 = arith.constant 30 : i32
    %51 = tpu.dynamic_rotate %2 by %c30_i32 dim 1 : vector<8x256xf32>, i32 -> vector<8x256xf32>
    %52 = vector.extract_strided_slice %0 {offsets = [12, 0], sizes = [1, 256], strides = [1, 1]} : vector<49x256xf32> to vector<1x256xf32>
    %53 = vector.broadcast %52 : vector<1x256xf32> to vector<8x256xf32>
    %54 = arith.mulf %51, %53 : vector<8x256xf32>
    %c29_i32 = arith.constant 29 : i32
    %55 = tpu.dynamic_rotate %2 by %c29_i32 dim 1 : vector<8x256xf32>, i32 -> vector<8x256xf32>
    %56 = vector.extract_strided_slice %0 {offsets = [13, 0], sizes = [1, 256], strides = [1, 1]} : vector<49x256xf32> to vector<1x256xf32>
    %57 = vector.broadcast %56 : vector<1x256xf32> to vector<8x256xf32>
    %58 = arith.mulf %55, %57 : vector<8x256xf32>
    %c19_i32 = arith.constant 19 : i32
    %59 = tpu.dynamic_rotate %2 by %c19_i32 dim 1 : vector<8x256xf32>, i32 -> vector<8x256xf32>
    %60 = vector.extract_strided_slice %0 {offsets = [14, 0], sizes = [1, 256], strides = [1, 1]} : vector<49x256xf32> to vector<1x256xf32>
    %61 = vector.broadcast %60 : vector<1x256xf32> to vector<8x256xf32>
    %62 = arith.mulf %59, %61 : vector<8x256xf32>
    %c18_i32 = arith.constant 18 : i32
    %63 = tpu.dynamic_rotate %2 by %c18_i32 dim 1 : vector<8x256xf32>, i32 -> vector<8x256xf32>
    %64 = vector.extract_strided_slice %0 {offsets = [15, 0], sizes = [1, 256], strides = [1, 1]} : vector<49x256xf32> to vector<1x256xf32>
    %65 = vector.broadcast %64 : vector<1x256xf32> to vector<8x256xf32>
    %66 = arith.mulf %63, %65 : vector<8x256xf32>
    %c17_i32 = arith.constant 17 : i32
    %67 = tpu.dynamic_rotate %2 by %c17_i32 dim 1 : vector<8x256xf32>, i32 -> vector<8x256xf32>
    %68 = vector.extract_strided_slice %0 {offsets = [16, 0], sizes = [1, 256], strides = [1, 1]} : vector<49x256xf32> to vector<1x256xf32>
    %69 = vector.broadcast %68 : vector<1x256xf32> to vector<8x256xf32>
    %70 = arith.mulf %67, %69 : vector<8x256xf32>
    %c16_i32 = arith.constant 16 : i32
    %71 = tpu.dynamic_rotate %2 by %c16_i32 dim 1 : vector<8x256xf32>, i32 -> vector<8x256xf32>
    %72 = vector.extract_strided_slice %0 {offsets = [17, 0], sizes = [1, 256], strides = [1, 1]} : vector<49x256xf32> to vector<1x256xf32>
    %73 = vector.broadcast %72 : vector<1x256xf32> to vector<8x256xf32>
    %74 = arith.mulf %71, %73 : vector<8x256xf32>
    %c15_i32 = arith.constant 15 : i32
    %75 = tpu.dynamic_rotate %2 by %c15_i32 dim 1 : vector<8x256xf32>, i32 -> vector<8x256xf32>
    %76 = vector.extract_strided_slice %0 {offsets = [18, 0], sizes = [1, 256], strides = [1, 1]} : vector<49x256xf32> to vector<1x256xf32>
    %77 = vector.broadcast %76 : vector<1x256xf32> to vector<8x256xf32>
    %78 = arith.mulf %75, %77 : vector<8x256xf32>
    %c14_i32 = arith.constant 14 : i32
    %79 = tpu.dynamic_rotate %2 by %c14_i32 dim 1 : vector<8x256xf32>, i32 -> vector<8x256xf32>
    %80 = vector.extract_strided_slice %0 {offsets = [19, 0], sizes = [1, 256], strides = [1, 1]} : vector<49x256xf32> to vector<1x256xf32>
    %81 = vector.broadcast %80 : vector<1x256xf32> to vector<8x256xf32>
    %82 = arith.mulf %79, %81 : vector<8x256xf32>
    %c13_i32 = arith.constant 13 : i32
    %83 = tpu.dynamic_rotate %2 by %c13_i32 dim 1 : vector<8x256xf32>, i32 -> vector<8x256xf32>
    %84 = vector.extract_strided_slice %0 {offsets = [20, 0], sizes = [1, 256], strides = [1, 1]} : vector<49x256xf32> to vector<1x256xf32>
    %85 = vector.broadcast %84 : vector<1x256xf32> to vector<8x256xf32>
    %86 = arith.mulf %83, %85 : vector<8x256xf32>
    %c3_i32 = arith.constant 3 : i32
    %87 = tpu.dynamic_rotate %2 by %c3_i32 dim 1 : vector<8x256xf32>, i32 -> vector<8x256xf32>
    %88 = vector.extract_strided_slice %0 {offsets = [21, 0], sizes = [1, 256], strides = [1, 1]} : vector<49x256xf32> to vector<1x256xf32>
    %89 = vector.broadcast %88 : vector<1x256xf32> to vector<8x256xf32>
    %90 = arith.mulf %87, %89 : vector<8x256xf32>
    %c2_i32 = arith.constant 2 : i32
    %91 = tpu.dynamic_rotate %2 by %c2_i32 dim 1 : vector<8x256xf32>, i32 -> vector<8x256xf32>
    %92 = vector.extract_strided_slice %0 {offsets = [22, 0], sizes = [1, 256], strides = [1, 1]} : vector<49x256xf32> to vector<1x256xf32>
    %93 = vector.broadcast %92 : vector<1x256xf32> to vector<8x256xf32>
    %94 = arith.mulf %91, %93 : vector<8x256xf32>
    %c1_i32 = arith.constant 1 : i32
    %95 = tpu.dynamic_rotate %2 by %c1_i32 dim 1 : vector<8x256xf32>, i32 -> vector<8x256xf32>
    %96 = vector.extract_strided_slice %0 {offsets = [23, 0], sizes = [1, 256], strides = [1, 1]} : vector<49x256xf32> to vector<1x256xf32>
    %97 = vector.broadcast %96 : vector<1x256xf32> to vector<8x256xf32>
    %98 = arith.mulf %95, %97 : vector<8x256xf32>
    %c255_i32 = arith.constant 255 : i32
    %99 = tpu.dynamic_rotate %2 by %c255_i32 dim 1 : vector<8x256xf32>, i32 -> vector<8x256xf32>
    %100 = vector.extract_strided_slice %0 {offsets = [25, 0], sizes = [1, 256], strides = [1, 1]} : vector<49x256xf32> to vector<1x256xf32>
    %101 = vector.broadcast %100 : vector<1x256xf32> to vector<8x256xf32>
    %102 = arith.mulf %99, %101 : vector<8x256xf32>
    %c254_i32 = arith.constant 254 : i32
    %103 = tpu.dynamic_rotate %2 by %c254_i32 dim 1 : vector<8x256xf32>, i32 -> vector<8x256xf32>
    %104 = vector.extract_strided_slice %0 {offsets = [26, 0], sizes = [1, 256], strides = [1, 1]} : vector<49x256xf32> to vector<1x256xf32>
    %105 = vector.broadcast %104 : vector<1x256xf32> to vector<8x256xf32>
    %106 = arith.mulf %103, %105 : vector<8x256xf32>
    %c253_i32 = arith.constant 253 : i32
    %107 = tpu.dynamic_rotate %2 by %c253_i32 dim 1 : vector<8x256xf32>, i32 -> vector<8x256xf32>
    %108 = vector.extract_strided_slice %0 {offsets = [27, 0], sizes = [1, 256], strides = [1, 1]} : vector<49x256xf32> to vector<1x256xf32>
    %109 = vector.broadcast %108 : vector<1x256xf32> to vector<8x256xf32>
    %110 = arith.mulf %107, %109 : vector<8x256xf32>
    %c243_i32 = arith.constant 243 : i32
    %111 = tpu.dynamic_rotate %2 by %c243_i32 dim 1 : vector<8x256xf32>, i32 -> vector<8x256xf32>
    %112 = vector.extract_strided_slice %0 {offsets = [28, 0], sizes = [1, 256], strides = [1, 1]} : vector<49x256xf32> to vector<1x256xf32>
    %113 = vector.broadcast %112 : vector<1x256xf32> to vector<8x256xf32>
    %114 = arith.mulf %111, %113 : vector<8x256xf32>
    %c242_i32 = arith.constant 242 : i32
    %115 = tpu.dynamic_rotate %2 by %c242_i32 dim 1 : vector<8x256xf32>, i32 -> vector<8x256xf32>
    %116 = vector.extract_strided_slice %0 {offsets = [29, 0], sizes = [1, 256], strides = [1, 1]} : vector<49x256xf32> to vector<1x256xf32>
    %117 = vector.broadcast %116 : vector<1x256xf32> to vector<8x256xf32>
    %118 = arith.mulf %115, %117 : vector<8x256xf32>
    %c241_i32 = arith.constant 241 : i32
    %119 = tpu.dynamic_rotate %2 by %c241_i32 dim 1 : vector<8x256xf32>, i32 -> vector<8x256xf32>
    %120 = vector.extract_strided_slice %0 {offsets = [30, 0], sizes = [1, 256], strides = [1, 1]} : vector<49x256xf32> to vector<1x256xf32>
    %121 = vector.broadcast %120 : vector<1x256xf32> to vector<8x256xf32>
    %122 = arith.mulf %119, %121 : vector<8x256xf32>
    %c240_i32 = arith.constant 240 : i32
    %123 = tpu.dynamic_rotate %2 by %c240_i32 dim 1 : vector<8x256xf32>, i32 -> vector<8x256xf32>
    %124 = vector.extract_strided_slice %0 {offsets = [31, 0], sizes = [1, 256], strides = [1, 1]} : vector<49x256xf32> to vector<1x256xf32>
    %125 = vector.broadcast %124 : vector<1x256xf32> to vector<8x256xf32>
    %126 = arith.mulf %123, %125 : vector<8x256xf32>
    %c239_i32 = arith.constant 239 : i32
    %127 = tpu.dynamic_rotate %2 by %c239_i32 dim 1 : vector<8x256xf32>, i32 -> vector<8x256xf32>
    %128 = vector.extract_strided_slice %0 {offsets = [32, 0], sizes = [1, 256], strides = [1, 1]} : vector<49x256xf32> to vector<1x256xf32>
    %129 = vector.broadcast %128 : vector<1x256xf32> to vector<8x256xf32>
    %130 = arith.mulf %127, %129 : vector<8x256xf32>
    %c238_i32 = arith.constant 238 : i32
    %131 = tpu.dynamic_rotate %2 by %c238_i32 dim 1 : vector<8x256xf32>, i32 -> vector<8x256xf32>
    %132 = vector.extract_strided_slice %0 {offsets = [33, 0], sizes = [1, 256], strides = [1, 1]} : vector<49x256xf32> to vector<1x256xf32>
    %133 = vector.broadcast %132 : vector<1x256xf32> to vector<8x256xf32>
    %134 = arith.mulf %131, %133 : vector<8x256xf32>
    %c237_i32 = arith.constant 237 : i32
    %135 = tpu.dynamic_rotate %2 by %c237_i32 dim 1 : vector<8x256xf32>, i32 -> vector<8x256xf32>
    %136 = vector.extract_strided_slice %0 {offsets = [34, 0], sizes = [1, 256], strides = [1, 1]} : vector<49x256xf32> to vector<1x256xf32>
    %137 = vector.broadcast %136 : vector<1x256xf32> to vector<8x256xf32>
    %138 = arith.mulf %135, %137 : vector<8x256xf32>
    %c227_i32 = arith.constant 227 : i32
    %139 = tpu.dynamic_rotate %2 by %c227_i32 dim 1 : vector<8x256xf32>, i32 -> vector<8x256xf32>
    %140 = vector.extract_strided_slice %0 {offsets = [35, 0], sizes = [1, 256], strides = [1, 1]} : vector<49x256xf32> to vector<1x256xf32>
    %141 = vector.broadcast %140 : vector<1x256xf32> to vector<8x256xf32>
    %142 = arith.mulf %139, %141 : vector<8x256xf32>
    %c226_i32 = arith.constant 226 : i32
    %143 = tpu.dynamic_rotate %2 by %c226_i32 dim 1 : vector<8x256xf32>, i32 -> vector<8x256xf32>
    %144 = vector.extract_strided_slice %0 {offsets = [36, 0], sizes = [1, 256], strides = [1, 1]} : vector<49x256xf32> to vector<1x256xf32>
    %145 = vector.broadcast %144 : vector<1x256xf32> to vector<8x256xf32>
    %146 = arith.mulf %143, %145 : vector<8x256xf32>
    %c225_i32 = arith.constant 225 : i32
    %147 = tpu.dynamic_rotate %2 by %c225_i32 dim 1 : vector<8x256xf32>, i32 -> vector<8x256xf32>
    %148 = vector.extract_strided_slice %0 {offsets = [37, 0], sizes = [1, 256], strides = [1, 1]} : vector<49x256xf32> to vector<1x256xf32>
    %149 = vector.broadcast %148 : vector<1x256xf32> to vector<8x256xf32>
    %150 = arith.mulf %147, %149 : vector<8x256xf32>
    %c224_i32 = arith.constant 224 : i32
    %151 = tpu.dynamic_rotate %2 by %c224_i32 dim 1 : vector<8x256xf32>, i32 -> vector<8x256xf32>
    %152 = vector.extract_strided_slice %0 {offsets = [38, 0], sizes = [1, 256], strides = [1, 1]} : vector<49x256xf32> to vector<1x256xf32>
    %153 = vector.broadcast %152 : vector<1x256xf32> to vector<8x256xf32>
    %154 = arith.mulf %151, %153 : vector<8x256xf32>
    %c223_i32 = arith.constant 223 : i32
    %155 = tpu.dynamic_rotate %2 by %c223_i32 dim 1 : vector<8x256xf32>, i32 -> vector<8x256xf32>
    %156 = vector.extract_strided_slice %0 {offsets = [39, 0], sizes = [1, 256], strides = [1, 1]} : vector<49x256xf32> to vector<1x256xf32>
    %157 = vector.broadcast %156 : vector<1x256xf32> to vector<8x256xf32>
    %158 = arith.mulf %155, %157 : vector<8x256xf32>
    %c222_i32 = arith.constant 222 : i32
    %159 = tpu.dynamic_rotate %2 by %c222_i32 dim 1 : vector<8x256xf32>, i32 -> vector<8x256xf32>
    %160 = vector.extract_strided_slice %0 {offsets = [40, 0], sizes = [1, 256], strides = [1, 1]} : vector<49x256xf32> to vector<1x256xf32>
    %161 = vector.broadcast %160 : vector<1x256xf32> to vector<8x256xf32>
    %162 = arith.mulf %159, %161 : vector<8x256xf32>
    %c221_i32 = arith.constant 221 : i32
    %163 = tpu.dynamic_rotate %2 by %c221_i32 dim 1 : vector<8x256xf32>, i32 -> vector<8x256xf32>
    %164 = vector.extract_strided_slice %0 {offsets = [41, 0], sizes = [1, 256], strides = [1, 1]} : vector<49x256xf32> to vector<1x256xf32>
    %165 = vector.broadcast %164 : vector<1x256xf32> to vector<8x256xf32>
    %166 = arith.mulf %163, %165 : vector<8x256xf32>
    %c211_i32 = arith.constant 211 : i32
    %167 = tpu.dynamic_rotate %2 by %c211_i32 dim 1 : vector<8x256xf32>, i32 -> vector<8x256xf32>
    %168 = vector.extract_strided_slice %0 {offsets = [42, 0], sizes = [1, 256], strides = [1, 1]} : vector<49x256xf32> to vector<1x256xf32>
    %169 = vector.broadcast %168 : vector<1x256xf32> to vector<8x256xf32>
    %170 = arith.mulf %167, %169 : vector<8x256xf32>
    %c210_i32 = arith.constant 210 : i32
    %171 = tpu.dynamic_rotate %2 by %c210_i32 dim 1 : vector<8x256xf32>, i32 -> vector<8x256xf32>
    %172 = vector.extract_strided_slice %0 {offsets = [43, 0], sizes = [1, 256], strides = [1, 1]} : vector<49x256xf32> to vector<1x256xf32>
    %173 = vector.broadcast %172 : vector<1x256xf32> to vector<8x256xf32>
    %174 = arith.mulf %171, %173 : vector<8x256xf32>
    %c209_i32 = arith.constant 209 : i32
    %175 = tpu.dynamic_rotate %2 by %c209_i32 dim 1 : vector<8x256xf32>, i32 -> vector<8x256xf32>
    %176 = vector.extract_strided_slice %0 {offsets = [44, 0], sizes = [1, 256], strides = [1, 1]} : vector<49x256xf32> to vector<1x256xf32>
    %177 = vector.broadcast %176 : vector<1x256xf32> to vector<8x256xf32>
    %178 = arith.mulf %175, %177 : vector<8x256xf32>
    %c208_i32 = arith.constant 208 : i32
    %179 = tpu.dynamic_rotate %2 by %c208_i32 dim 1 : vector<8x256xf32>, i32 -> vector<8x256xf32>
    %180 = vector.extract_strided_slice %0 {offsets = [45, 0], sizes = [1, 256], strides = [1, 1]} : vector<49x256xf32> to vector<1x256xf32>
    %181 = vector.broadcast %180 : vector<1x256xf32> to vector<8x256xf32>
    %182 = arith.mulf %179, %181 : vector<8x256xf32>
    %c207_i32 = arith.constant 207 : i32
    %183 = tpu.dynamic_rotate %2 by %c207_i32 dim 1 : vector<8x256xf32>, i32 -> vector<8x256xf32>
    %184 = vector.extract_strided_slice %0 {offsets = [46, 0], sizes = [1, 256], strides = [1, 1]} : vector<49x256xf32> to vector<1x256xf32>
    %185 = vector.broadcast %184 : vector<1x256xf32> to vector<8x256xf32>
    %186 = arith.mulf %183, %185 : vector<8x256xf32>
    %c206_i32 = arith.constant 206 : i32
    %187 = tpu.dynamic_rotate %2 by %c206_i32 dim 1 : vector<8x256xf32>, i32 -> vector<8x256xf32>
    %188 = vector.extract_strided_slice %0 {offsets = [47, 0], sizes = [1, 256], strides = [1, 1]} : vector<49x256xf32> to vector<1x256xf32>
    %189 = vector.broadcast %188 : vector<1x256xf32> to vector<8x256xf32>
    %190 = arith.mulf %187, %189 : vector<8x256xf32>
    %c205_i32 = arith.constant 205 : i32
    %191 = tpu.dynamic_rotate %2 by %c205_i32 dim 1 : vector<8x256xf32>, i32 -> vector<8x256xf32>
    %192 = vector.extract_strided_slice %0 {offsets = [48, 0], sizes = [1, 256], strides = [1, 1]} : vector<49x256xf32> to vector<1x256xf32>
    %193 = vector.broadcast %192 : vector<1x256xf32> to vector<8x256xf32>
    %194 = arith.mulf %191, %193 : vector<8x256xf32>
    %195 = tpu.concatenate %6, %10, %14, %18, %22, %26, %30, %34, %38, %42, %46, %50, %54, %58, %62, %66 in 0 : vector<8x256xf32>, vector<8x256xf32>, vector<8x256xf32>, vector<8x256xf32>, vector<8x256xf32>, vector<8x256xf32>, vector<8x256xf32>, vector<8x256xf32>, vector<8x256xf32>, vector<8x256xf32>, vector<8x256xf32>, vector<8x256xf32>, vector<8x256xf32>, vector<8x256xf32>, vector<8x256xf32>, vector<8x256xf32> -> vector<128x256xf32>
    %196 = tpu.concatenate %70, %74, %78, %82, %86, %90, %94, %98, %2, %102, %106, %110, %114, %118, %122, %126 in 0 : vector<8x256xf32>, vector<8x256xf32>, vector<8x256xf32>, vector<8x256xf32>, vector<8x256xf32>, vector<8x256xf32>, vector<8x256xf32>, vector<8x256xf32>, vector<8x256xf32>, vector<8x256xf32>, vector<8x256xf32>, vector<8x256xf32>, vector<8x256xf32>, vector<8x256xf32>, vector<8x256xf32>, vector<8x256xf32> -> vector<128x256xf32>
    %197 = tpu.concatenate %130, %134, %138, %142, %146, %150, %154, %158, %162, %166, %170, %174, %178, %182, %186, %190 in 0 : vector<8x256xf32>, vector<8x256xf32>, vector<8x256xf32>, vector<8x256xf32>, vector<8x256xf32>, vector<8x256xf32>, vector<8x256xf32>, vector<8x256xf32>, vector<8x256xf32>, vector<8x256xf32>, vector<8x256xf32>, vector<8x256xf32>, vector<8x256xf32>, vector<8x256xf32>, vector<8x256xf32>, vector<8x256xf32> -> vector<128x256xf32>
    %198 = tpu.concatenate %195, %196, %197, %194 in 0 : vector<128x256xf32>, vector<128x256xf32>, vector<128x256xf32>, vector<8x256xf32> -> vector<392x256xf32>
    %c0_4 = arith.constant 0 : index
    %c0_5 = arith.constant 0 : index
    %199 = vector.load %arg3[%c0_4, %c0_5] : memref<8x392xf32, #tpu.memory_space<vmem>>, vector<8x392xf32>
    %cst = arith.constant dense<0.000000e+00> : vector<8x256xf32>
    %200 = tpu.matmul %199, %198, %cst {dimension_numbers = #tpu.dot_dimension_numbers<[1], [0], [0], [1], [0, 0, 1, 1], [], []>} : vector<8x392xf32>, vector<392x256xf32>, vector<8x256xf32> -> vector<8x256xf32>
    %c0_6 = arith.constant 0 : index
    %c0_7 = arith.constant 0 : index
    %201 = vector.load %arg7[%c0_6, %c0_7] : memref<8x1xf32, #tpu.memory_space<vmem>>, vector<8x1xf32>
    %202 = vector.broadcast %201 : vector<8x1xf32> to vector<8x256xf32>
    %203 = arith.addf %200, %202 : vector<8x256xf32>
    %cst_8 = arith.constant 0.000000e+00 : f32
    %204 = vector.broadcast %cst_8 : f32 to vector<8x256xf32>
    %205 = arith.maximumf %203, %204 : vector<8x256xf32>
    %c0_9 = arith.constant 0 : index
    %c0_10 = arith.constant 0 : index
    %206 = vector.load %arg8[%c0_9, %c0_10] : memref<8x8xf32, #tpu.memory_space<vmem>>, vector<8x8xf32>
    %cst_11 = arith.constant dense<0.000000e+00> : vector<8x256xf32>
    %207 = tpu.matmul %206, %205, %cst_11 {dimension_numbers = #tpu.dot_dimension_numbers<[1], [0], [0], [1], [0, 0, 1, 1], [], []>} : vector<8x8xf32>, vector<8x256xf32>, vector<8x256xf32> -> vector<8x256xf32>
    %c0_12 = arith.constant 0 : index
    %c0_13 = arith.constant 0 : index
    %208 = vector.load %arg9[%c0_12, %c0_13] : memref<8x1xf32, #tpu.memory_space<vmem>>, vector<8x1xf32>
    %209 = vector.broadcast %208 : vector<8x1xf32> to vector<8x256xf32>
    %210 = arith.addf %207, %209 : vector<8x256xf32>
    %cst_14 = arith.constant 0.000000e+00 : f32
    %211 = vector.broadcast %cst_14 : f32 to vector<8x256xf32>
    %212 = arith.maximumf %210, %211 : vector<8x256xf32>
    %213 = vector.shape_cast %212 : vector<8x256xf32> to vector<1x8x256xf32>
    %c0_15 = arith.constant 0 : index
    %c0_16 = arith.constant 0 : index
    %c0_17 = arith.constant 0 : index
    %214 = vector.load %arg12[%c0_15, %c0_16, %c0_17] : memref<1x8x256xf32, #tpu.memory_space<vmem>>, vector<1x8x256xf32>
    tpu.vector_store %arg12[%c0_15, %c0_16, %c0_17], %213 {strides = array<i32>} : memref<1x8x256xf32, #tpu.memory_space<vmem>>, vector<1x8x256xf32>,
    %215 = vector.extract_strided_slice %0 {offsets = [17, 0], sizes = [1, 256], strides = [1, 1]} : vector<49x256xf32> to vector<1x256xf32>
    %216 = vector.extract_strided_slice %0 {offsets = [31, 0], sizes = [1, 256], strides = [1, 1]} : vector<49x256xf32> to vector<1x256xf32>
    %217 = vector.extract_strided_slice %0 {offsets = [23, 0], sizes = [1, 256], strides = [1, 1]} : vector<49x256xf32> to vector<1x256xf32>
    %218 = vector.extract_strided_slice %0 {offsets = [25, 0], sizes = [1, 256], strides = [1, 1]} : vector<49x256xf32> to vector<1x256xf32>
    %c16_i32_18 = arith.constant 16 : i32
    %219 = tpu.dynamic_rotate %212 by %c16_i32_18 dim 1 : vector<8x256xf32>, i32 -> vector<8x256xf32>
    %220 = vector.broadcast %215 : vector<1x256xf32> to vector<8x256xf32>
    %221 = arith.mulf %219, %220 : vector<8x256xf32>
    %cst_19 = arith.constant 1.000000e+00 : f32
    %222 = vector.broadcast %cst_19 : f32 to vector<1x256xf32>
    %223 = arith.subf %222, %215 : vector<1x256xf32>
    %224 = vector.broadcast %223 : vector<1x256xf32> to vector<8x256xf32>
    %225 = arith.mulf %224, %212 : vector<8x256xf32>
    %226 = arith.addf %221, %225 : vector<8x256xf32>
    %c240_i32_20 = arith.constant 240 : i32
    %227 = tpu.dynamic_rotate %212 by %c240_i32_20 dim 1 : vector<8x256xf32>, i32 -> vector<8x256xf32>
    %228 = vector.broadcast %216 : vector<1x256xf32> to vector<8x256xf32>
    %229 = arith.mulf %227, %228 : vector<8x256xf32>
    %cst_21 = arith.constant 1.000000e+00 : f32
    %230 = vector.broadcast %cst_21 : f32 to vector<1x256xf32>
    %231 = arith.subf %230, %216 : vector<1x256xf32>
    %232 = vector.broadcast %231 : vector<1x256xf32> to vector<8x256xf32>
    %233 = arith.mulf %232, %212 : vector<8x256xf32>
    %234 = arith.addf %229, %233 : vector<8x256xf32>
    %cst_22 = arith.constant 2.500000e-01 : f32
    %235 = vector.broadcast %cst_22 : f32 to vector<8x256xf32>
    %236 = arith.mulf %235, %226 : vector<8x256xf32>
    %cst_23 = arith.constant 7.500000e-01 : f32
    %237 = vector.broadcast %cst_23 : f32 to vector<8x256xf32>
    %238 = arith.mulf %237, %212 : vector<8x256xf32>
    %239 = arith.addf %236, %238 : vector<8x256xf32>
    %cst_24 = arith.constant 7.500000e-01 : f32
    %240 = vector.broadcast %cst_24 : f32 to vector<8x256xf32>
    %241 = arith.mulf %240, %212 : vector<8x256xf32>
    %cst_25 = arith.constant 2.500000e-01 : f32
    %242 = vector.broadcast %cst_25 : f32 to vector<8x256xf32>
    %243 = arith.mulf %242, %234 : vector<8x256xf32>
    %244 = arith.addf %241, %243 : vector<8x256xf32>
    %c1_i32_26 = arith.constant 1 : i32
    %245 = tpu.dynamic_rotate %239 by %c1_i32_26 dim 1 : vector<8x256xf32>, i32 -> vector<8x256xf32>
    %246 = vector.broadcast %217 : vector<1x256xf32> to vector<8x256xf32>
    %247 = arith.mulf %245, %246 : vector<8x256xf32>
    %cst_27 = arith.constant 1.000000e+00 : f32
    %248 = vector.broadcast %cst_27 : f32 to vector<1x256xf32>
    %249 = arith.subf %248, %217 : vector<1x256xf32>
    %250 = vector.broadcast %249 : vector<1x256xf32> to vector<8x256xf32>
    %251 = arith.mulf %250, %239 : vector<8x256xf32>
    %252 = arith.addf %247, %251 : vector<8x256xf32>
    %c255_i32_28 = arith.constant 255 : i32
    %253 = tpu.dynamic_rotate %239 by %c255_i32_28 dim 1 : vector<8x256xf32>, i32 -> vector<8x256xf32>
    %254 = vector.broadcast %218 : vector<1x256xf32> to vector<8x256xf32>
    %255 = arith.mulf %253, %254 : vector<8x256xf32>
    %cst_29 = arith.constant 1.000000e+00 : f32
    %256 = vector.broadcast %cst_29 : f32 to vector<1x256xf32>
    %257 = arith.subf %256, %218 : vector<1x256xf32>
    %258 = vector.broadcast %257 : vector<1x256xf32> to vector<8x256xf32>
    %259 = arith.mulf %258, %239 : vector<8x256xf32>
    %260 = arith.addf %255, %259 : vector<8x256xf32>
    %cst_30 = arith.constant 2.500000e-01 : f32
    %261 = vector.broadcast %cst_30 : f32 to vector<8x256xf32>
    %262 = arith.mulf %261, %252 : vector<8x256xf32>
    %cst_31 = arith.constant 7.500000e-01 : f32
    %263 = vector.broadcast %cst_31 : f32 to vector<8x256xf32>
    %264 = arith.mulf %263, %239 : vector<8x256xf32>
    %265 = arith.addf %262, %264 : vector<8x256xf32>
    %cst_32 = arith.constant 7.500000e-01 : f32
    %266 = vector.broadcast %cst_32 : f32 to vector<8x256xf32>
    %267 = arith.mulf %266, %239 : vector<8x256xf32>
    %cst_33 = arith.constant 2.500000e-01 : f32
    %268 = vector.broadcast %cst_33 : f32 to vector<8x256xf32>
    %269 = arith.mulf %268, %260 : vector<8x256xf32>
    %270 = arith.addf %267, %269 : vector<8x256xf32>
    %c1_i32_34 = arith.constant 1 : i32
    %271 = tpu.dynamic_rotate %244 by %c1_i32_34 dim 1 : vector<8x256xf32>, i32 -> vector<8x256xf32>
    %272 = vector.broadcast %217 : vector<1x256xf32> to vector<8x256xf32>
    %273 = arith.mulf %271, %272 : vector<8x256xf32>
    %cst_35 = arith.constant 1.000000e+00 : f32
    %274 = vector.broadcast %cst_35 : f32 to vector<1x256xf32>
    %275 = arith.subf %274, %217 : vector<1x256xf32>
    %276 = vector.broadcast %275 : vector<1x256xf32> to vector<8x256xf32>
    %277 = arith.mulf %276, %244 : vector<8x256xf32>
    %278 = arith.addf %273, %277 : vector<8x256xf32>
    %c255_i32_36 = arith.constant 255 : i32
    %279 = tpu.dynamic_rotate %244 by %c255_i32_36 dim 1 : vector<8x256xf32>, i32 -> vector<8x256xf32>
    %280 = vector.broadcast %218 : vector<1x256xf32> to vector<8x256xf32>
    %281 = arith.mulf %279, %280 : vector<8x256xf32>
    %cst_37 = arith.constant 1.000000e+00 : f32
    %282 = vector.broadcast %cst_37 : f32 to vector<1x256xf32>
    %283 = arith.subf %282, %218 : vector<1x256xf32>
    %284 = vector.broadcast %283 : vector<1x256xf32> to vector<8x256xf32>
    %285 = arith.mulf %284, %244 : vector<8x256xf32>
    %286 = arith.addf %281, %285 : vector<8x256xf32>
    %cst_38 = arith.constant 2.500000e-01 : f32
    %287 = vector.broadcast %cst_38 : f32 to vector<8x256xf32>
    %288 = arith.mulf %287, %278 : vector<8x256xf32>
    %cst_39 = arith.constant 7.500000e-01 : f32
    %289 = vector.broadcast %cst_39 : f32 to vector<8x256xf32>
    %290 = arith.mulf %289, %244 : vector<8x256xf32>
    %291 = arith.addf %288, %290 : vector<8x256xf32>
    %cst_40 = arith.constant 7.500000e-01 : f32
    %292 = vector.broadcast %cst_40 : f32 to vector<8x256xf32>
    %293 = arith.mulf %292, %244 : vector<8x256xf32>
    %cst_41 = arith.constant 2.500000e-01 : f32
    %294 = vector.broadcast %cst_41 : f32 to vector<8x256xf32>
    %295 = arith.mulf %294, %286 : vector<8x256xf32>
    %296 = arith.addf %293, %295 : vector<8x256xf32>
    %c17_i32_42 = arith.constant 17 : i32
    %297 = tpu.dynamic_rotate %296 by %c17_i32_42 dim 1 : vector<8x256xf32>, i32 -> vector<8x256xf32>
    %298 = vector.extract_strided_slice %0 {offsets = [16, 0], sizes = [1, 256], strides = [1, 1]} : vector<49x256xf32> to vector<1x256xf32>
    %299 = vector.broadcast %298 : vector<1x256xf32> to vector<8x256xf32>
    %300 = arith.mulf %297, %299 : vector<8x256xf32>
    %c16_i32_43 = arith.constant 16 : i32
    %301 = tpu.dynamic_rotate %291 by %c16_i32_43 dim 1 : vector<8x256xf32>, i32 -> vector<8x256xf32>
    %302 = vector.extract_strided_slice %0 {offsets = [17, 0], sizes = [1, 256], strides = [1, 1]} : vector<49x256xf32> to vector<1x256xf32>
    %303 = vector.broadcast %302 : vector<1x256xf32> to vector<8x256xf32>
    %304 = arith.mulf %301, %303 : vector<8x256xf32>
    %c16_i32_44 = arith.constant 16 : i32
    %305 = tpu.dynamic_rotate %296 by %c16_i32_44 dim 1 : vector<8x256xf32>, i32 -> vector<8x256xf32>
    %306 = vector.extract_strided_slice %0 {offsets = [17, 0], sizes = [1, 256], strides = [1, 1]} : vector<49x256xf32> to vector<1x256xf32>
    %307 = vector.broadcast %306 : vector<1x256xf32> to vector<8x256xf32>
    %308 = arith.mulf %305, %307 : vector<8x256xf32>
    %c1_i32_45 = arith.constant 1 : i32
    %309 = tpu.dynamic_rotate %270 by %c1_i32_45 dim 1 : vector<8x256xf32>, i32 -> vector<8x256xf32>
    %310 = vector.extract_strided_slice %0 {offsets = [23, 0], sizes = [1, 256], strides = [1, 1]} : vector<49x256xf32> to vector<1x256xf32>
    %311 = vector.broadcast %310 : vector<1x256xf32> to vector<8x256xf32>
    %312 = arith.mulf %309, %311 : vector<8x256xf32>
    %c1_i32_46 = arith.constant 1 : i32
    %313 = tpu.dynamic_rotate %296 by %c1_i32_46 dim 1 : vector<8x256xf32>, i32 -> vector<8x256xf32>
    %314 = vector.extract_strided_slice %0 {offsets = [23, 0], sizes = [1, 256], strides = [1, 1]} : vector<49x256xf32> to vector<1x256xf32>
    %315 = vector.broadcast %314 : vector<1x256xf32> to vector<8x256xf32>
    %316 = arith.mulf %313, %315 : vector<8x256xf32>
    %317 = tpu.concatenate %300, %304, %308, %312, %265, %270, %316, %291, %296 in 0 : vector<8x256xf32>, vector<8x256xf32>, vector<8x256xf32>, vector<8x256xf32>, vector<8x256xf32>, vector<8x256xf32>, vector<8x256xf32>, vector<8x256xf32>, vector<8x256xf32> -> vector<72x256xf32>
    %c16_i32_47 = arith.constant 16 : i32
    %318 = tpu.dynamic_rotate %291 by %c16_i32_47 dim 1 : vector<8x256xf32>, i32 -> vector<8x256xf32>
    %319 = vector.extract_strided_slice %0 {offsets = [17, 0], sizes = [1, 256], strides = [1, 1]} : vector<49x256xf32> to vector<1x256xf32>
    %320 = vector.broadcast %319 : vector<1x256xf32> to vector<8x256xf32>
    %321 = arith.mulf %318, %320 : vector<8x256xf32>
    %c16_i32_48 = arith.constant 16 : i32
    %322 = tpu.dynamic_rotate %296 by %c16_i32_48 dim 1 : vector<8x256xf32>, i32 -> vector<8x256xf32>
    %323 = vector.extract_strided_slice %0 {offsets = [17, 0], sizes = [1, 256], strides = [1, 1]} : vector<49x256xf32> to vector<1x256xf32>
    %324 = vector.broadcast %323 : vector<1x256xf32> to vector<8x256xf32>
    %325 = arith.mulf %322, %324 : vector<8x256xf32>
    %c15_i32_49 = arith.constant 15 : i32
    %326 = tpu.dynamic_rotate %291 by %c15_i32_49 dim 1 : vector<8x256xf32>, i32 -> vector<8x256xf32>
    %327 = vector.extract_strided_slice %0 {offsets = [18, 0], sizes = [1, 256], strides = [1, 1]} : vector<49x256xf32> to vector<1x256xf32>
    %328 = vector.broadcast %327 : vector<1x256xf32> to vector<8x256xf32>
    %329 = arith.mulf %326, %328 : vector<8x256xf32>
    %c255_i32_50 = arith.constant 255 : i32
    %330 = tpu.dynamic_rotate %265 by %c255_i32_50 dim 1 : vector<8x256xf32>, i32 -> vector<8x256xf32>
    %331 = vector.extract_strided_slice %0 {offsets = [25, 0], sizes = [1, 256], strides = [1, 1]} : vector<49x256xf32> to vector<1x256xf32>
    %332 = vector.broadcast %331 : vector<1x256xf32> to vector<8x256xf32>
    %333 = arith.mulf %330, %332 : vector<8x256xf32>
    %c255_i32_51 = arith.constant 255 : i32
    %334 = tpu.dynamic_rotate %291 by %c255_i32_51 dim 1 : vector<8x256xf32>, i32 -> vector<8x256xf32>
    %335 = vector.extract_strided_slice %0 {offsets = [25, 0], sizes = [1, 256], strides = [1, 1]} : vector<49x256xf32> to vector<1x256xf32>
    %336 = vector.broadcast %335 : vector<1x256xf32> to vector<8x256xf32>
    %337 = arith.mulf %334, %336 : vector<8x256xf32>
    %338 = tpu.concatenate %321, %325, %329, %265, %270, %333, %291, %296, %337 in 0 : vector<8x256xf32>, vector<8x256xf32>, vector<8x256xf32>, vector<8x256xf32>, vector<8x256xf32>, vector<8x256xf32>, vector<8x256xf32>, vector<8x256xf32>, vector<8x256xf32> -> vector<72x256xf32>
    %c1_i32_52 = arith.constant 1 : i32
    %339 = tpu.dynamic_rotate %270 by %c1_i32_52 dim 1 : vector<8x256xf32>, i32 -> vector<8x256xf32>
    %340 = vector.extract_strided_slice %0 {offsets = [23, 0], sizes = [1, 256], strides = [1, 1]} : vector<49x256xf32> to vector<1x256xf32>
    %341 = vector.broadcast %340 : vector<1x256xf32> to vector<8x256xf32>
    %342 = arith.mulf %339, %341 : vector<8x256xf32>
    %c1_i32_53 = arith.constant 1 : i32
    %343 = tpu.dynamic_rotate %296 by %c1_i32_53 dim 1 : vector<8x256xf32>, i32 -> vector<8x256xf32>
    %344 = vector.extract_strided_slice %0 {offsets = [23, 0], sizes = [1, 256], strides = [1, 1]} : vector<49x256xf32> to vector<1x256xf32>
    %345 = vector.broadcast %344 : vector<1x256xf32> to vector<8x256xf32>
    %346 = arith.mulf %343, %345 : vector<8x256xf32>
    %c241_i32_54 = arith.constant 241 : i32
    %347 = tpu.dynamic_rotate %270 by %c241_i32_54 dim 1 : vector<8x256xf32>, i32 -> vector<8x256xf32>
    %348 = vector.extract_strided_slice %0 {offsets = [30, 0], sizes = [1, 256], strides = [1, 1]} : vector<49x256xf32> to vector<1x256xf32>
    %349 = vector.broadcast %348 : vector<1x256xf32> to vector<8x256xf32>
    %350 = arith.mulf %347, %349 : vector<8x256xf32>
    %c240_i32_55 = arith.constant 240 : i32
    %351 = tpu.dynamic_rotate %265 by %c240_i32_55 dim 1 : vector<8x256xf32>, i32 -> vector<8x256xf32>
    %352 = vector.extract_strided_slice %0 {offsets = [31, 0], sizes = [1, 256], strides = [1, 1]} : vector<49x256xf32> to vector<1x256xf32>
    %353 = vector.broadcast %352 : vector<1x256xf32> to vector<8x256xf32>
    %354 = arith.mulf %351, %353 : vector<8x256xf32>
    %c240_i32_56 = arith.constant 240 : i32
    %355 = tpu.dynamic_rotate %270 by %c240_i32_56 dim 1 : vector<8x256xf32>, i32 -> vector<8x256xf32>
    %356 = vector.extract_strided_slice %0 {offsets = [31, 0], sizes = [1, 256], strides = [1, 1]} : vector<49x256xf32> to vector<1x256xf32>
    %357 = vector.broadcast %356 : vector<1x256xf32> to vector<8x256xf32>
    %358 = arith.mulf %355, %357 : vector<8x256xf32>
    %359 = tpu.concatenate %342, %265, %270, %346, %291, %296, %350, %354, %358 in 0 : vector<8x256xf32>, vector<8x256xf32>, vector<8x256xf32>, vector<8x256xf32>, vector<8x256xf32>, vector<8x256xf32>, vector<8x256xf32>, vector<8x256xf32>, vector<8x256xf32> -> vector<72x256xf32>
    %c255_i32_57 = arith.constant 255 : i32
    %360 = tpu.dynamic_rotate %265 by %c255_i32_57 dim 1 : vector<8x256xf32>, i32 -> vector<8x256xf32>
    %361 = vector.extract_strided_slice %0 {offsets = [25, 0], sizes = [1, 256], strides = [1, 1]} : vector<49x256xf32> to vector<1x256xf32>
    %362 = vector.broadcast %361 : vector<1x256xf32> to vector<8x256xf32>
    %363 = arith.mulf %360, %362 : vector<8x256xf32>
    %c255_i32_58 = arith.constant 255 : i32
    %364 = tpu.dynamic_rotate %291 by %c255_i32_58 dim 1 : vector<8x256xf32>, i32 -> vector<8x256xf32>
    %365 = vector.extract_strided_slice %0 {offsets = [25, 0], sizes = [1, 256], strides = [1, 1]} : vector<49x256xf32> to vector<1x256xf32>
    %366 = vector.broadcast %365 : vector<1x256xf32> to vector<8x256xf32>
    %367 = arith.mulf %364, %366 : vector<8x256xf32>
    %c240_i32_59 = arith.constant 240 : i32
    %368 = tpu.dynamic_rotate %265 by %c240_i32_59 dim 1 : vector<8x256xf32>, i32 -> vector<8x256xf32>
    %369 = vector.extract_strided_slice %0 {offsets = [31, 0], sizes = [1, 256], strides = [1, 1]} : vector<49x256xf32> to vector<1x256xf32>
    %370 = vector.broadcast %369 : vector<1x256xf32> to vector<8x256xf32>
    %371 = arith.mulf %368, %370 : vector<8x256xf32>
    %c240_i32_60 = arith.constant 240 : i32
    %372 = tpu.dynamic_rotate %270 by %c240_i32_60 dim 1 : vector<8x256xf32>, i32 -> vector<8x256xf32>
    %373 = vector.extract_strided_slice %0 {offsets = [31, 0], sizes = [1, 256], strides = [1, 1]} : vector<49x256xf32> to vector<1x256xf32>
    %374 = vector.broadcast %373 : vector<1x256xf32> to vector<8x256xf32>
    %375 = arith.mulf %372, %374 : vector<8x256xf32>
    %c239_i32_61 = arith.constant 239 : i32
    %376 = tpu.dynamic_rotate %265 by %c239_i32_61 dim 1 : vector<8x256xf32>, i32 -> vector<8x256xf32>
    %377 = vector.extract_strided_slice %0 {offsets = [32, 0], sizes = [1, 256], strides = [1, 1]} : vector<49x256xf32> to vector<1x256xf32>
    %378 = vector.broadcast %377 : vector<1x256xf32> to vector<8x256xf32>
    %379 = arith.mulf %376, %378 : vector<8x256xf32>
    %380 = tpu.concatenate %265, %270, %363, %291, %296, %367, %371, %375, %379 in 0 : vector<8x256xf32>, vector<8x256xf32>, vector<8x256xf32>, vector<8x256xf32>, vector<8x256xf32>, vector<8x256xf32>, vector<8x256xf32>, vector<8x256xf32>, vector<8x256xf32> -> vector<72x256xf32>
    %381 = tpu.concatenate %317, %338, %359, %380 in 1 : vector<72x256xf32>, vector<72x256xf32>, vector<72x256xf32>, vector<72x256xf32> -> vector<72x1024xf32>
    %c0_62 = arith.constant 0 : index
    %c0_63 = arith.constant 0 : index
    %382 = vector.load %arg10[%c0_62, %c0_63] : memref<8x72xf32, #tpu.memory_space<vmem>>, vector<8x72xf32>
    %cst_64 = arith.constant dense<0.000000e+00> : vector<8x1024xf32>
    %383 = tpu.matmul %382, %381, %cst_64 {dimension_numbers = #tpu.dot_dimension_numbers<[1], [0], [0], [1], [0, 0, 1, 1], [], []>} : vector<8x72xf32>, vector<72x1024xf32>, vector<8x1024xf32> -> vector<8x1024xf32>
    %c0_65 = arith.constant 0 : index
    %c0_66 = arith.constant 0 : index
    %384 = vector.load %arg11[%c0_65, %c0_66] : memref<8x1xf32, #tpu.memory_space<vmem>>, vector<8x1xf32>
    %385 = vector.broadcast %384 : vector<8x1xf32> to vector<8x1024xf32>
    %386 = arith.addf %383, %385 : vector<8x1024xf32>
    %cst_67 = arith.constant 0.000000e+00 : f32
    %387 = vector.broadcast %cst_67 : f32 to vector<8x1024xf32>
    %388 = arith.maximumf %386, %387 : vector<8x1024xf32>
    %389 = vector.shape_cast %388 : vector<8x1024xf32> to vector<1x8x1024xf32>
    %c0_68 = arith.constant 0 : index
    %c0_69 = arith.constant 0 : index
    %c0_70 = arith.constant 0 : index
    %390 = vector.load %arg13[%c0_68, %c0_69, %c0_70] : memref<1x8x1024xf32, #tpu.memory_space<vmem>>, vector<1x8x1024xf32>
    tpu.vector_store %arg13[%c0_68, %c0_69, %c0_70], %389 {strides = array<i32>} : memref<1x8x1024xf32, #tpu.memory_space<vmem>>, vector<1x8x1024xf32>,
    return
  }
  func.func @transform_0(%arg0: i32) -> (i32, i32, i32) {
    %c0_i32 = arith.constant 0 : i32
    %c0_i32_0 = arith.constant 0 : i32
    %c0_i32_1 = arith.constant 0 : i32
    return %arg0, %c0_i32, %c0_i32_0 : i32, i32, i32
  }
  func.func @transform_1(%arg0: i32) -> (i32, i32) {
    %c0_i32 = arith.constant 0 : i32
    %c0_i32_0 = arith.constant 0 : i32
    %c0_i32_1 = arith.constant 0 : i32
    return %c0_i32, %c0_i32_0 : i32, i32
  }
  func.func @transform_2(%arg0: i32) -> (i32, i32) {
    %c0_i32 = arith.constant 0 : i32
    %c0_i32_0 = arith.constant 0 : i32
    %c0_i32_1 = arith.constant 0 : i32
    return %c0_i32, %c0_i32_0 : i32, i32
  }
  func.func @transform_3(%arg0: i32) -> (i32, i32) {
    %c0_i32 = arith.constant 0 : i32
    %c0_i32_0 = arith.constant 0 : i32
    %c0_i32_1 = arith.constant 0 : i32
    return %c0_i32, %c0_i32_0 : i32, i32
  }
  func.func @transform_4(%arg0: i32) -> (i32, i32) {
    %c0_i32 = arith.constant 0 : i32
    %c0_i32_0 = arith.constant 0 : i32
    %c0_i32_1 = arith.constant 0 : i32
    return %c0_i32, %c0_i32_0 : i32, i32
  }
  func.func @transform_5(%arg0: i32) -> (i32, i32) {
    %c0_i32 = arith.constant 0 : i32
    %c0_i32_0 = arith.constant 0 : i32
    %c0_i32_1 = arith.constant 0 : i32
    return %c0_i32, %c0_i32_0 : i32, i32
  }
  func.func @transform_6(%arg0: i32) -> (i32, i32) {
    %c0_i32 = arith.constant 0 : i32
    %c0_i32_0 = arith.constant 0 : i32
    %c0_i32_1 = arith.constant 0 : i32
    return %c0_i32, %c0_i32_0 : i32, i32
  }
  func.func @transform_7(%arg0: i32) -> (i32, i32) {
    %c0_i32 = arith.constant 0 : i32
    %c0_i32_0 = arith.constant 0 : i32
    %c0_i32_1 = arith.constant 0 : i32
    return %c0_i32, %c0_i32_0 : i32, i32
  }
  func.func @transform_8(%arg0: i32) -> (i32, i32) {
    %c0_i32 = arith.constant 0 : i32
    %c0_i32_0 = arith.constant 0 : i32
    %c0_i32_1 = arith.constant 0 : i32
    return %c0_i32, %c0_i32_0 : i32, i32
  }
  func.func @transform_9(%arg0: i32) -> (i32, i32) {
    %c0_i32 = arith.constant 0 : i32
    %c0_i32_0 = arith.constant 0 : i32
    %c0_i32_1 = arith.constant 0 : i32
    return %c0_i32, %c0_i32_0 : i32, i32
  }
  func.func @transform_10(%arg0: i32) -> (i32, i32) {
    %c0_i32 = arith.constant 0 : i32
    %c0_i32_0 = arith.constant 0 : i32
    %c0_i32_1 = arith.constant 0 : i32
    return %c0_i32, %c0_i32_0 : i32, i32
  }
  func.func @transform_11(%arg0: i32) -> (i32, i32, i32) {
    %c0_i32 = arith.constant 0 : i32
    %c0_i32_0 = arith.constant 0 : i32
    %c0_i32_1 = arith.constant 0 : i32
    return %arg0, %c0_i32, %c0_i32_0 : i32, i32, i32
  }
  func.func @transform_12(%arg0: i32) -> (i32, i32, i32) {
    %c0_i32 = arith.constant 0 : i32
    %c0_i32_0 = arith.constant 0 : i32
    %c0_i32_1 = arith.constant 0 : i32
    return %arg0, %c0_i32, %c0_i32_0 : i32, i32, i32
  }
}

</mosaic_0001>

<bundles_post_ra>
// kernel: tpu_custom_call.1
= control target key start
LH: loop header
LB: loop body
LE: loop exit
PB: predicated region body
PF: predicated region fallthrough
CT: control target
= control target key end

     0   :  { %24 = vsyncpa [#allocation6], 0  ;;  %s3811_s0 = inlined_call_operand.vmem [shape: f32[2,8,256], index: 0, kind: input, shape index: {}]   ;;  %s3812_s1 = inlined_call_operand.hbm [shape: f32[49,256], index: 1, kind: input, shape index: {}]   ;;  %s3813_s2 = inlined_call_operand.hbm [shape: f32[8,392], index: 2, kind: input, shape index: {}]   ;;  %s3814_s3 = inlined_call_operand.<no memory space> [shape: f32[1,1], index: 3, kind: input, shape index: {}]   ;;  %s3815_s6 = inlined_call_operand.vmem [shape: f32[8,1], index: 6, kind: input, shape index: {}]   ;;  %s3816_s7 = inlined_call_operand.vmem [shape: f32[8,8], index: 7, kind: input, shape index: {}]   ;;  %s3817_s8 = inlined_call_operand.vmem [shape: f32[8,1], index: 8, kind: input, shape index: {}]   ;;  %s3818_s9 = inlined_call_operand.vmem [shape: f32[8,72], index: 9, kind: input, shape index: {}]   ;;  %s3819_s10 = inlined_call_operand.vmem [shape: f32[8,1], index: 10, kind: input, shape index: {}]   ;;  %s3820_s11 = inlined_call_operand.hbm [shape: f32[2,8,256], index: 11, kind: output, shape index: {0}]   ;;  %s3821_s12 = inlined_call_operand.hbm [shape: f32[2,8,1024], index: 12, kind: output, shape index: {1}]   ;;  %s3822_s4 = inlined_call_operand.<no memory space> [shape: f32[1,1], index: 4, kind: input, shape index: {}]   ;;  %s3823_s5 = inlined_call_operand.<no memory space> [shape: f32[1,1], index: 5, kind: input, shape index: {}]  }
   0x1   :  { %25 = vsyncpa [#allocation9], 0 }
   0x2   :  { %26 = vsyncpa [#allocation7], 0 }
   0x3   :  { %28 = vsyncpa [#allocation7 + $0x1], 0 }
   0x4   :  { %29 = vsyncpa [#allocation12], 0 }
   0x5   :  { %31 = vsyncpa [#allocation12 + $0x1], 0  ;;  %s2821_s20 = smov 0   ;;  %s2823_s21 = smov 0  }
   0x6   :  { %s2825_s22 = smov 0   ;;  %s2827_s23 = smov 0  }
   0x7 LB: > { %3830 = sst [smem:[#allocation17_spill]] %s2694_s22  ;;  %s2842_s4 = sadd.s32 4294967295, %s2698_s23   ;;  %s2698_s23 = sphi %s2827_s23, %s3844_s23   ;;  %s2694_s22 = sphi %s2825_s22, %s3846_s22   ;;  %s2690_s21 = sphi %s2823_s21, %s3848_s21   ;;  %s2686_s20 = sphi %s2821_s20, %s3847_s20  }
   0x8   : > { %s2226_s5 = sadd.s32 4294967294, %s2698_s23   ;;  %s2846_s24 = sadd.s32 1, %s2698_s23  }
   0x9   : > { %3831 = sst [smem:[#allocation18_spill]] %s2846_s24  ;;  %s280_s25 = sadd.s32 1, %s2694_s22 }
   0xa   : > { %s277_s26 = ssub.s32 %s2698_s23, %s2846_s24  ;;  %p290_p0 = scmp.ne.s32.totalorder %s2694_s22, %s2690_s21 }
   0xb   : > { %p278_p1 = scmp.eq.s32.totalorder %s277_s26, 0  ;;  %p291_p2 = scmp.eq.s32.totalorder %s2842_s4, 1 }
   0xc   : > { %p296_p3 = scmp.ne.s32.totalorder %s2690_s21, %s2686_s20  ;;  %p297_p4 = scmp.eq.s32.totalorder %s2226_s5, 1 }
   0xd   : > { %s2857_s27 = scalar_select %p278_p1, %s2694_s22, %s280_s25  }
   0xe   : > { %p2859_p5 = por %p291_p2, %p290_p0  ;;  %p2863_p6 = por %p297_p4, %p296_p3 }
   0xf   : > { %3832 = sst [smem:[#allocation19_spill]] %s2857_s27  ;;  %p2227_p7 = scmp.ge.s32.totalorder %s2698_s23, 1 }
  0x10   : > { %s3833_s28 = scalar_select %p2859_p5, 1, 0 }
  0x11   : > { %s3834_s29 = scalar_select %p2863_p6, 1, 0 }
  0x12   : > { %p330_p8 = scmp.lt.s32.totalorder %s2698_s23, 3  ;;  %p3824_p9 = scmp.eq.s32.totalorder %s2842_s4, 0 }
  0x13   : > { %s2700_s13 = smov [#allocation5]   ;;  %s2701_s3 = smov [#allocation8]  }
  0x14   : > { %p2870_p10 = pnand %p2227_p7, %p330_p8  ;;  %s342_s14 = sshll.u32 %s2700_s13, 4  ;;  %s343_s14 = int_to_ptr.vmem [resolvable:$true] %s342_s14 }
  0x15   : > { %s356_s16 = sshll.u32 %s2701_s3, 4  ;;  %s2540_s19 = scalar_lea.hbm %s3812_s1, 1792  ;;  %s2882_s16 = int_to_ptr.vmem [resolvable:$true] %s356_s16 }
  0x16   : > { %s3835_s30 = scalar_select %p2870_p10, 1, 0 }
  0x17   : > { %p2433_p11 = pneg %p2870_p10  ;;  %p2541_p13 = scmp.ne.s32.totalorder %s3812_s1, %s2540_s19 }
  0x18   : > { %p2547_p3 = scmp.lt.u32.totalorder %s2540_s19, %s3812_s1 }
  0x19   : > { %p2878_p12 = pnand %p3824_p9, %p2433_p11 }
  0x1b   : > { %p2542_p0 = pneg %p2878_p12 }
  0x1d   : > { %p2543_p1 = pnand %p2542_p0, %p2541_p13 }
  0x1f   : > { %p2544_p2 = pneg %p2543_p1 }
  0x21   : > { %p2549_p4 = pnand %p2547_p3, %p2544_p2 }
  0x23   : > { %2552 = shalt.err (!%p2549_p4)
}
  0x24   : > { %s2553_s3 = scalar_lea.vmem %s343_s14, 1792  ;;  %p2561_p9 = scmp.lt.s32.totalorder %s343_s14, %s343_s14 }
  0x25   : > { %p2554_p7 = scmp.ne.s32.totalorder %s343_s14, %s2553_s3  ;;  %p2562_p6 = scmp.lt.s32.totalorder %s2553_s3, %s2553_s3 }
  0x27   : > { %p2556_p8 = pnand %p2554_p7, %p2542_p0  ;;  %p2563_p5 = por %p2562_p6, %p2561_p9 }
  0x29   : > { %p2557_p11 = pneg %p2556_p8 }
  0x2b   : > { %p2564_p10 = pnand %p2563_p5, %p2557_p11 }
  0x2d   : > { %2567 = shalt.err (!%p2564_p10)
}
  0x2e   : > { %s2702_s17 = smov 256   ;;  %s2703_s18 = smov 16  }
  0x2f   : > { %2436 = dma.hbm_to_vmem [thread:$0]  (!%p2878_p12), %s3812_s1, 1792, %s343_s14, [#allocation6], %s2702_s17, %s2702_s17, %s2703_s18  }
  0x30   : > { %s2568_s13 = scalar_lea.hbm %s3813_s2, 512 }
  0x31   : > { %p2569_p13 = scmp.ne.s32.totalorder %s3813_s2, %s2568_s13  ;;  %p2575_p9 = scmp.lt.u32.totalorder %s2568_s13, %s3813_s2 }
  0x33   : > { %p2571_p5 = pnand %p2569_p13, %p2542_p0 }
  0x35   : > { %p2572_p6 = pneg %p2571_p5 }
  0x37   : > { %p2577_p10 = pnand %p2575_p9, %p2572_p6 }
  0x39   : > { %2580 = shalt.err (!%p2577_p10)
}
  0x3a   : > { %s2581_s14 = scalar_lea.vmem %s2882_s16, 512  ;;  %p2589_p4 = scmp.lt.s32.totalorder %s2882_s16, %s2882_s16 }
  0x3b   : > { %p2582_p1 = scmp.ne.s32.totalorder %s2882_s16, %s2581_s14  ;;  %p2590_p7 = scmp.lt.s32.totalorder %s2581_s14, %s2581_s14 }
  0x3d   : > { %p2584_p2 = pnand %p2582_p1, %p2542_p0  ;;  %p2591_p8 = por %p2590_p7, %p2589_p4 }
  0x3f   : > { %p2585_p3 = pneg %p2584_p2 }
  0x41   : > { %p2592_p11 = pnand %p2591_p8, %p2585_p3 }
  0x43   : > { %2595 = shalt.err (!%p2592_p11)
}
  0x44   : > { %2439 = dma.hbm_to_vmem [thread:$0]  (!%p2878_p12), %s3813_s2, 512, %s2882_s16, [#allocation9]  }
  0x45   : > { %p3837_p13 = scmp.ne.s32.totalorder %s3835_s30, 0 }
  0x46   : > { %p3838_p5 = scmp.eq.s32.totalorder (!%p3837_p13), %s2842_s4, 0 }
  0x47   : > { %401 = sbr.rel (%p3837_p13) target bundleno = 1519 (0x5ef), region = 64 }
  0x4e   : > { %2669 = dma.done.wait (%p3838_p5), [#allocation6], 1792   ;;  %p3839_p0 = pmov %p3838_p5 }
  0x50   : > { %2671 = vsyncadd (%p3839_p0), [#allocation6], 4294965504  ;;  %p3840_p6 = pmov %p3839_p0 }
  0x51   : > { %p3841_p9 = pmov %p3839_p0 }
  0x52   : > { %2673 = dma.done.wait (%p3840_p6), [#allocation9], 512  }
  0x53   : > { %2675 = vsyncadd (%p3841_p9), [#allocation9], 4294966784  ;;  %p452_p10 = scmp.lt.s32.totalorder %s2842_s4, 1  ;;  %s2704_s18 = smov 50   ;;  %v477_v2 = vlaneseq  ;;  %v3028_v7 = vld [vmem:[#allocation5] sm:$0xff]  ;;  %v3030_v8 = vld [vmem:[#allocation5 + $0x8] sm:$0xff] }
  0x54   : > { %s2705_s19 = smov 51   ;;  %s2706_s5 = smov 49   ;;  %v1292_v26 = vld [vmem:[#allocation8 + $0x8] sm:$0xff] }
  0x55   : > { %s453_s27 = scalar_select %p452_p10, %s2842_s4, 1  ;;  %v3016_v3 = vshrl.u32 %v477_v2, 7  ;;  %v3018_v4 = vand.u32 127, %v477_v2  ;;  %1369 = vmatprep.mubr.f32.mxu0 %v1292_v26 }
  0x56   : > { %s2707_s25 = smov 48   ;;  %s2708_s26 = smov 47  }
  0x57   : > { %s2254_s15 = sshll.u32 %s453_s27, 4  ;;  %s2709_s13 = smov 46   ;;  %v3023_v5 = vsub.s32 0, %v3016_v3  ;;  %v3026_v6 = vsub.s32 1, %v3016_v3  ;;  %vm496_vm0 = vcmp.lt.s32.totalorder %v3018_v4, 50  ;;  %vm479_vm1 = vcmp.lt.s32.totalorder %v3018_v4, 51 }
  0x58   : > { %s456_s17 = scalar_lea.vmem %s3811_s0, %s2254_s15  ;;  %s2710_s3 = smov 45   ;;  %v3047_v17 = vsub.s32 2, %v3016_v3  ;;  %v3054_v25 = vsub.s32 3, %v3016_v3  ;;  %vm513_vm2 = vcmp.lt.s32.totalorder %v3018_v4, 49  ;;  %vm530_vm3 = vcmp.lt.s32.totalorder %v3018_v4, 48 }
  0x59   : > { %v2946_v0 = vld [vmem:[%s456_s17] sm:$0xff]  ;;  %v2950_v1 = vld [vmem:[%s456_s17 + $0x8] sm:$0xff]  ;;  %s2711_s14 = smov 35   ;;  %s2712_s22 = smov 34   ;;  %v489_v11 = vrot.slane %v3030_v8, %v3023_v5  ;;  %v506_v12 = vrot.slane %v3030_v8, %v3026_v6  ;;  %v485_v13 = vrot.slane %v3028_v7, %v3023_v5  ;;  %v502_v14 = vrot.slane %v3028_v7, %v3026_v6 }
  0x5a   : > { %492 = vrot.lane.b32.xlu1 %v2946_v0, %s2704_s18  ;;  %473 = vrot.lane.b32.xlu0 %v2946_v0, %s2705_s19  ;;  %s2713_s24 = smov 33   ;;  %s2714_s27 = smov 32   ;;  %v519_v31 = vrot.slane %v3028_v7, %v3047_v17  ;;  %v523_v32 = vrot.slane %v3030_v8, %v3047_v17  ;;  %v536_v35 = vrot.slane %v3028_v7, %v3054_v25  ;;  %v3075_v43 = vsub.s32 4, %v3016_v3 }
  0x5b   : > { %s2715_s15 = smov 31   ;;  %s2716_s16 = smov 30   ;;  %v540_v36 = vrot.slane %v3030_v8, %v3054_v25  ;;  %v3080_v47 = vsub.s32 5, %v3016_v3  ;;  %vm547_vm4 = vcmp.lt.s32.totalorder %v3018_v4, 47  ;;  %vm564_vm5 = vcmp.lt.s32.totalorder %v3018_v4, 46 }
  0x5c   : > { %s2717_s30 = smov 29   ;;  %s2718_s17 = smov 19   ;;  %v553_v52 = vrot.slane %v3028_v7, %v3075_v43  ;;  %v557_v53 = vrot.slane %v3030_v8, %v3075_v43  ;;  %v3095_v63 = vsub.s32 6, %v3016_v3  ;;  %vm581_vm6 = vcmp.lt.s32.totalorder %v3018_v4, 45 }
  0x5d   : > { %v570_v55 = vrot.slane %v3028_v7, %v3080_v47  ;;  %v574_v56 = vrot.slane %v3030_v8, %v3080_v47  ;;  %vm598_vm7 = vcmp.lt.s32.totalorder %v3018_v4, 35  ;;  %vm615_vm8 = vcmp.lt.s32.totalorder %v3018_v4, 34  ;;  %p3842_p1 = scmp.ne.s32.totalorder %s3833_s28, 0 }
  0x5e   : > { %494 = vrot.lane.b32.xlu1 %v2950_v1, %s2704_s18  ;;  %475 = vrot.lane.b32.xlu0 %v2950_v1, %s2705_s19  ;;  %s2719_s18 = smov 18   ;;  %s2720_s19 = smov 17   ;;  %vm632_vm9 = vcmp.lt.s32.totalorder %v3018_v4, 33  ;;  %vm649_vm10 = vcmp.lt.s32.totalorder %v3018_v4, 32  ;;  %vm666_vm11 = vcmp.lt.s32.totalorder %v3018_v4, 31  ;;  %vm683_vm12 = vcmp.lt.s32.totalorder %v3018_v4, 30 }
  0x5f   : > { %vm700_vm13 = vcmp.lt.s32.totalorder %v3018_v4, 29  ;;  %vm717_vm14 = vcmp.lt.s32.totalorder %v3018_v4, 19  ;;  %vm734_vm15 = vcmp.lt.s32.totalorder %v3018_v4, 18 }
  0x62   : > { %511 = vrot.lane.b32.xlu1 %v2950_v1, %s2706_s5  ;;  %509 = vrot.lane.b32.xlu0 %v2946_v0, %s2706_s5  ;;  %s2721_s5 = smov 16  }
  0x66   : > { %528 = vrot.lane.b32.xlu1 %v2950_v1, %s2707_s25  ;;  %526 = vrot.lane.b32.xlu0 %v2946_v0, %s2707_s25  ;;  %s2722_s25 = smov 15  }
  0x6a   : > { %545 = vrot.lane.b32.xlu1 %v2950_v1, %s2708_s26  ;;  %543 = vrot.lane.b32.xlu0 %v2946_v0, %s2708_s26  ;;  %s2723_s26 = smov 14  }
  0x6e   : > { %562 = vrot.lane.b32.xlu1 %v2950_v1, %s2709_s13  ;;  %560 = vrot.lane.b32.xlu0 %v2946_v0, %s2709_s13  ;;  %s2724_s13 = smov 13  }
  0x72   : > { %579 = vrot.lane.b32.xlu1 %v2950_v1, %s2710_s3  ;;  %577 = vrot.lane.b32.xlu0 %v2946_v0, %s2710_s3  ;;  %s2725_s3 = smov 3  }
  0x76   : > { %596 = vrot.lane.b32.xlu1 %v2950_v1, %s2711_s14  ;;  %594 = vrot.lane.b32.xlu0 %v2946_v0, %s2711_s14  ;;  %s2726_s14 = smov 2  }
  0x7a   : > { %613 = vrot.lane.b32.xlu1 %v2950_v1, %s2712_s22  ;;  %611 = vrot.lane.b32.xlu0 %v2946_v0, %s2712_s22  ;;  %s2727_s22 = smov 1  }
  0x7e   : > { %630 = vrot.lane.b32.xlu1 %v2950_v1, %s2713_s24  ;;  %628 = vrot.lane.b32.xlu0 %v2946_v0, %s2713_s24  ;;  %s2728_s24 = smov 127  }
  0x82   : > { %647 = vrot.lane.b32.xlu1 %v2950_v1, %s2714_s27  ;;  %645 = vrot.lane.b32.xlu0 %v2946_v0, %s2714_s27  ;;  %s2729_s27 = smov 126  }
  0x86   : > { %664 = vrot.lane.b32.xlu1 %v2950_v1, %s2715_s15  ;;  %662 = vrot.lane.b32.xlu0 %v2946_v0, %s2715_s15  ;;  %s2730_s15 = smov 125  }
  0x8a   : > { %681 = vrot.lane.b32.xlu1 %v2950_v1, %s2716_s16  ;;  %679 = vrot.lane.b32.xlu0 %v2946_v0, %s2716_s16  ;;  %s2731_s16 = smov 115  }
  0x8e   : > { %698 = vrot.lane.b32.xlu1 %v2950_v1, %s2717_s30  ;;  %696 = vrot.lane.b32.xlu0 %v2946_v0, %s2717_s30  ;;  %s2732_s30 = smov 114  }
  0x92   : > { %715 = vrot.lane.b32.xlu1 %v2950_v1, %s2718_s17  ;;  %713 = vrot.lane.b32.xlu0 %v2946_v0, %s2718_s17  ;;  %s2733_s17 = smov 113  }
  0x96   : > { %732 = vrot.lane.b32.xlu1 %v2950_v1, %s2719_s18  ;;  %730 = vrot.lane.b32.xlu0 %v2946_v0, %s2719_s18  ;;  %s2734_s18 = smov 112  }
  0x9a   : > { %749 = vrot.lane.b32.xlu1 %v2950_v1, %s2720_s19  ;;  %747 = vrot.lane.b32.xlu0 %v2946_v0, %s2720_s19 }
  0x9e   : > { %766 = vrot.lane.b32.xlu1 %v2950_v1, %s2721_s5  ;;  %764 = vrot.lane.b32.xlu0 %v2946_v0, %s2721_s5 }
  0xa2   : > { %783 = vrot.lane.b32.xlu1 %v2950_v1, %s2722_s25  ;;  %781 = vrot.lane.b32.xlu0 %v2946_v0, %s2722_s25 }
  0xa6   : > { %800 = vrot.lane.b32.xlu1 %v2950_v1, %s2723_s26  ;;  %798 = vrot.lane.b32.xlu0 %v2946_v0, %s2723_s26  ;;  %s2735_s26 = smov 111  }
  0xaa   : > { %817 = vrot.lane.b32.xlu1 %v2950_v1, %s2724_s13  ;;  %815 = vrot.lane.b32.xlu0 %v2946_v0, %s2724_s13  ;;  %s2736_s13 = smov 110  }
  0xae   : > { %834 = vrot.lane.b32.xlu1 %v2950_v1, %s2725_s3  ;;  %832 = vrot.lane.b32.xlu0 %v2946_v0, %s2725_s3  ;;  %s2737_s3 = smov 109  }
  0xb2   : > { %851 = vrot.lane.b32.xlu1 %v2950_v1, %s2726_s14  ;;  %849 = vrot.lane.b32.xlu0 %v2946_v0, %s2726_s14  ;;  %s2738_s14 = smov 99  }
  0xb6   : > { %868 = vrot.lane.b32.xlu1 %v2950_v1, %s2727_s22  ;;  %866 = vrot.lane.b32.xlu0 %v2946_v0, %s2727_s22 }
  0xba   : > { %885 = vrot.lane.b32.xlu1 %v2950_v1, %s2728_s24  ;;  %883 = vrot.lane.b32.xlu0 %v2946_v0, %s2728_s24 }
  0xbe   : > { %902 = vrot.lane.b32.xlu1 %v2950_v1, %s2729_s27  ;;  %900 = vrot.lane.b32.xlu0 %v2946_v0, %s2729_s27  ;;  %s2739_s27 = smov 98  }
  0xc2   : > { %919 = vrot.lane.b32.xlu1 %v2950_v1, %s2730_s15  ;;  %917 = vrot.lane.b32.xlu0 %v2946_v0, %s2730_s15  ;;  %s2740_s15 = smov 97  }
  0xc6   : > { %936 = vrot.lane.b32.xlu1 %v2950_v1, %s2731_s16  ;;  %934 = vrot.lane.b32.xlu0 %v2946_v0, %s2731_s16  ;;  %s2741_s16 = smov 96  }
  0xca   : > { %953 = vrot.lane.b32.xlu1 %v2950_v1, %s2732_s30  ;;  %951 = vrot.lane.b32.xlu0 %v2946_v0, %s2732_s30  ;;  %s2742_s30 = smov 95  }
  0xcc   : > { %v493_v9 = vpop.permute.xlu1 %492  ;;  %v474_v10 = vpop.permute.xlu0 %473 }
  0xce   : > { %970 = vrot.lane.b32.xlu1 %v2950_v1, %s2733_s17  ;;  %968 = vrot.lane.b32.xlu0 %v2946_v0, %s2733_s17 }
  0xd0   : > { %v495_v15 = vpop.permute.xlu1 %494  ;;  %v476_v16 = vpop.permute.xlu0 %475 }
  0xd1   : > { %v498_v18 = vsel %vm496_vm0, %v495_v15, %v493_v9  ;;  %v481_v19 = vsel %vm479_vm1, %v476_v16, %v474_v10  ;;  %v480_v20 = vsel %vm479_vm1, %v474_v10, %v476_v16  ;;  %v497_v21 = vsel %vm496_vm0, %v493_v9, %v495_v15 }
  0xd2   : > { %987 = vrot.lane.b32.xlu1 %v2950_v1, %s2734_s18  ;;  %985 = vrot.lane.b32.xlu0 %v2946_v0, %s2734_s18  ;;  %v491_v22 = vmul.f32 %v489_v11, %v480_v20  ;;  %v508_v23 = vmul.f32 %v506_v12, %v497_v21  ;;  %v490_v24 = vmul.f32 %v485_v13, %v481_v19  ;;  %v3100_v11 = vsub.s32 7, %v3016_v3 }
  0xd3   : > { %v507_v27 = vmul.f32 %v502_v14, %v498_v18  ;;  %v587_v16 = vrot.slane %v3028_v7, %v3095_v63  ;;  %v591_v18 = vrot.slane %v3030_v8, %v3095_v63  ;;  %vm751_vm0 = vcmp.lt.s32.totalorder %v3018_v4, 17 }
  0xd4   : > { %v512_v28 = vpop.permute.xlu1 %511  ;;  %v510_v29 = vpop.permute.xlu0 %509  ;;  %v2257_v30 = vpack.c.bf16 %v508_v23, %v491_v22  ;;  %v604_v3 = vrot.slane %v3028_v7, %v3100_v11  ;;  %v608_v20 = vrot.slane %v3030_v8, %v3100_v11  ;;  %v3116_v7 = vld [vmem:[#allocation5 + $0x10] sm:$0xff]  ;;  %vm768_vm1 = vcmp.lt.s32.totalorder %v3018_v4, 16 }
  0xd5   : > { %v2259_v33 = vpack.c.bf16 %v507_v27, %v490_v24  ;;  %v515_v34 = vsel %vm513_vm2, %v512_v28, %v510_v29  ;;  %v514_v37 = vsel %vm513_vm2, %v510_v29, %v512_v28  ;;  %vm785_vm2 = vcmp.lt.s32.totalorder %v3018_v4, 15 }
  0xd6   : > { %1004 = vrot.lane.b32.xlu1 %v2950_v1, %s2735_s26  ;;  %1002 = vrot.lane.b32.xlu0 %v2946_v0, %s2735_s26  ;;  %v524_v40 = vmul.f32 %v519_v31, %v515_v34  ;;  %v525_v44 = vmul.f32 %v523_v32, %v514_v37  ;;  %v3118_v31 = vld [vmem:[#allocation5 + $0x18] sm:$0xff] }
  0xd7   : > { %2258 = vmatprep.subr.bf16.mxu0 %v2257_v30 }
  0xd8   : > { %2260 = vmatpush1.bf16.msra.mxu0 %v2259_v33  ;;  %v529_v38 = vpop.permute.xlu1 %528  ;;  %v527_v39 = vpop.permute.xlu0 %526 }
  0xd9   : > { %v531_v41 = vsel %vm530_vm3, %v527_v39, %v529_v38  ;;  %v532_v42 = vsel %vm530_vm3, %v529_v38, %v527_v39  ;;  %v638_v38 = vrot.slane %v3116_v7, %v3026_v6  ;;  %v642_v39 = vrot.slane %v3118_v31, %v3026_v6 }
  0xda   : > { %v541_v45 = vmul.f32 %v536_v35, %v532_v42  ;;  %v542_v46 = vmul.f32 %v540_v36, %v531_v41  ;;  %1021 = vrot.lane.b32.xlu1 %v2950_v1, %s2736_s13  ;;  %1019 = vrot.lane.b32.xlu0 %v2946_v0, %s2736_s13  ;;  %v621_v35 = vrot.slane %v3116_v7, %v3023_v5  ;;  %s2743_s13 = smov 94   ;;  %vm802_vm3 = vcmp.lt.s32.totalorder %v3018_v4, 14 }
  0xdb   : > { %v625_v36 = vrot.slane %v3118_v31, %v3023_v5 }
  0xdc   : > { %v546_v48 = vpop.permute.xlu1 %545  ;;  %v544_v49 = vpop.permute.xlu0 %543  ;;  %v2261_v50 = vpack.c.bf16 %v542_v46, %v525_v44  ;;  %v2263_v51 = vpack.c.bf16 %v541_v45, %v524_v40 }
  0xdd   : > { %v549_v54 = vsel %vm547_vm4, %v546_v48, %v544_v49  ;;  %v548_v57 = vsel %vm547_vm4, %v544_v49, %v546_v48  ;;  %vm819_vm4 = vcmp.lt.s32.totalorder %v3018_v4, 13 }
  0xde   : > { %1038 = vrot.lane.b32.xlu1 %v2950_v1, %s2737_s3  ;;  %1036 = vrot.lane.b32.xlu0 %v2946_v0, %s2737_s3  ;;  %v558_v60 = vmul.f32 %v553_v52, %v549_v54  ;;  %v559_v2 = vmul.f32 %v557_v53, %v548_v57  ;;  %s2744_s3 = smov 93  }
  0xdf   : > { %2262 = vmatprep.subr.bf16.mxu0 %v2261_v50 }
  0xe0   : > { %2264 = vmatpush1.bf16.msra.mxu0 %v2263_v51  ;;  %v563_v58 = vpop.permute.xlu1 %562  ;;  %v561_v59 = vpop.permute.xlu0 %560 }
  0xe1   : > { %v565_v61 = vsel %vm564_vm5, %v561_v59, %v563_v58  ;;  %v566_v62 = vsel %vm564_vm5, %v563_v58, %v561_v59  ;;  %v672_v58 = vrot.slane %v3116_v7, %v3054_v25  ;;  %v676_v59 = vrot.slane %v3118_v31, %v3054_v25 }
  0xe2   : > { %v575_v9 = vmul.f32 %v570_v55, %v566_v62  ;;  %v576_v10 = vmul.f32 %v574_v56, %v565_v61  ;;  %1055 = vrot.lane.b32.xlu1 %v2950_v1, %s2738_s14  ;;  %1053 = vrot.lane.b32.xlu0 %v2946_v0, %s2738_s14  ;;  %v655_v55 = vrot.slane %v3116_v7, %v3047_v17  ;;  %s2745_s14 = smov 83   ;;  %vm836_vm5 = vcmp.lt.s32.totalorder %v3018_v4, 3 }
  0xe3   : > { %v659_v56 = vrot.slane %v3118_v31, %v3047_v17 }
  0xe4   : > { %v580_v12 = vpop.permute.xlu1 %579  ;;  %v578_v13 = vpop.permute.xlu0 %577  ;;  %v2265_v14 = vpack.c.bf16 %v576_v10, %v559_v2  ;;  %v2267_v15 = vpack.c.bf16 %v575_v9, %v558_v60 }
  0xe5   : > { %v583_v19 = vsel %vm581_vm6, %v580_v12, %v578_v13  ;;  %v582_v21 = vsel %vm581_vm6, %v578_v13, %v580_v12  ;;  %vm853_vm6 = vcmp.lt.s32.totalorder %v3018_v4, 2 }
  0xe6   : > { %1072 = vrot.lane.b32.xlu1 %v2950_v1, %s2739_s27  ;;  %1070 = vrot.lane.b32.xlu0 %v2946_v0, %s2739_s27  ;;  %v592_v24 = vmul.f32 %v587_v16, %v583_v19  ;;  %v593_v28 = vmul.f32 %v591_v18, %v582_v21  ;;  %s2746_s27 = smov 82  }
  0xe7   : > { %2266 = vmatprep.subr.bf16.mxu0 %v2265_v14 }
  0xe8   : > { %2268 = vmatpush1.bf16.msra.mxu0 %v2267_v15  ;;  %v597_v22 = vpop.permute.xlu1 %596  ;;  %v595_v23 = vpop.permute.xlu0 %594 }
  0xe9   : > { %v599_v26 = vsel %vm598_vm7, %v595_v23, %v597_v22  ;;  %v600_v27 = vsel %vm598_vm7, %v597_v22, %v595_v23  ;;  %v706_v22 = vrot.slane %v3116_v7, %v3080_v47  ;;  %v710_v23 = vrot.slane %v3118_v31, %v3080_v47 }
  0xea   : > { %v609_v29 = vmul.f32 %v604_v3, %v600_v27  ;;  %v610_v30 = vmul.f32 %v608_v20, %v599_v26  ;;  %1089 = vrot.lane.b32.xlu1 %v2950_v1, %s2740_s15  ;;  %1087 = vrot.lane.b32.xlu0 %v2946_v0, %s2740_s15  ;;  %v689_v3 = vrot.slane %v3116_v7, %v3075_v43  ;;  %s2747_s15 = smov 81   ;;  %vm870_vm7 = vcmp.lt.s32.totalorder %v3018_v4, 1 }
  0xeb   : > { %v693_v20 = vrot.slane %v3118_v31, %v3075_v43 }
  0xec   : > { %v614_v8 = vpop.permute.xlu1 %613  ;;  %v612_v32 = vpop.permute.xlu0 %611  ;;  %v2269_v33 = vpack.c.bf16 %v610_v30, %v593_v28  ;;  %v2271_v34 = vpack.c.bf16 %v609_v29, %v592_v24 }
  0xed   : > { %v617_v37 = vsel %vm615_vm8, %v614_v8, %v612_v32  ;;  %v616_v40 = vsel %vm615_vm8, %v612_v32, %v614_v8  ;;  %vm887_vm8 = vcmp.lt.s32.totalorder %v3018_v4, 127 }
  0xee   : > { %1106 = vrot.lane.b32.xlu1 %v2950_v1, %s2741_s16  ;;  %1104 = vrot.lane.b32.xlu0 %v2946_v0, %s2741_s16  ;;  %v626_v44 = vmul.f32 %v621_v35, %v617_v37  ;;  %v627_v48 = vmul.f32 %v625_v36, %v616_v40  ;;  %s2748_s16 = smov 80  }
  0xef   : > { %2270 = vmatprep.subr.bf16.mxu0 %v2269_v33 }
  0xf0   : > { %2272 = vmatpush1.bf16.msra.mxu0 %v2271_v34  ;;  %v631_v41 = vpop.permute.xlu1 %630  ;;  %v629_v42 = vpop.permute.xlu0 %628 }
  0xf1   : > { %v633_v45 = vsel %vm632_vm9, %v629_v42, %v631_v41  ;;  %v634_v46 = vsel %vm632_vm9, %v631_v41, %v629_v42  ;;  %v740_v41 = vrot.slane %v3116_v7, %v3100_v11  ;;  %v744_v42 = vrot.slane %v3118_v31, %v3100_v11 }
  0xf2   : > { %v643_v49 = vmul.f32 %v638_v38, %v634_v46  ;;  %v644_v50 = vmul.f32 %v642_v39, %v633_v45  ;;  %1123 = vrot.lane.b32.xlu1 %v2950_v1, %s2742_s30  ;;  %1121 = vrot.lane.b32.xlu0 %v2946_v0, %s2742_s30  ;;  %v723_v38 = vrot.slane %v3116_v7, %v3095_v63  ;;  %v3176_v7 = vld [vmem:[#allocation5 + $0x20] sm:$0xff]  ;;  %s2749_s30 = smov 79   ;;  %vm904_vm9 = vcmp.lt.s32.totalorder %v3018_v4, 126 }
  0xf3   : > { %v727_v39 = vrot.slane %v3118_v31, %v3095_v63 }
  0xf4   : > { %v648_v51 = vpop.permute.xlu1 %647  ;;  %v646_v52 = vpop.permute.xlu0 %645  ;;  %v2273_v53 = vpack.c.bf16 %v644_v50, %v627_v48  ;;  %v2275_v54 = vpack.c.bf16 %v643_v49, %v626_v44 }
  0xf5   : > { %v651_v57 = vsel %vm649_vm10, %v648_v51, %v646_v52  ;;  %v650_v60 = vsel %vm649_vm10, %v646_v52, %v648_v51  ;;  %vm921_vm10 = vcmp.lt.s32.totalorder %v3018_v4, 125 }
  0xf6   : > { %1140 = vrot.lane.b32.xlu1 %v2950_v1, %s2743_s13  ;;  %1138 = vrot.lane.b32.xlu0 %v2946_v0, %s2743_s13  ;;  %v660_v2 = vmul.f32 %v655_v55, %v651_v57  ;;  %v661_v12 = vmul.f32 %v659_v56, %v650_v60  ;;  %s2751_s13 = smov 78  }
  0xf7   : > { %2274 = vmatprep.subr.bf16.mxu0 %v2273_v53 }
  0xf8   : > { %2276 = vmatpush1.bf16.msra.mxu0 %v2275_v54  ;;  %v665_v61 = vpop.permute.xlu1 %664  ;;  %v663_v62 = vpop.permute.xlu0 %662  ;;  %v3178_v54 = vld [vmem:[#allocation5 + $0x28] sm:$0xff] }
  0xf9   : > { %v667_v9 = vsel %vm666_vm11, %v663_v62, %v665_v61  ;;  %v668_v10 = vsel %vm666_vm11, %v665_v61, %v663_v62  ;;  %v3196_v61 = vrot.slane %v3176_v7, %v3026_v6  ;;  %v3200_v62 = vrot.slane %v3178_v54, %v3026_v6 }
  0xfa   : > { %v677_v13 = vmul.f32 %v672_v58, %v668_v10  ;;  %v678_v14 = vmul.f32 %v676_v59, %v667_v9  ;;  %1157 = vrot.lane.b32.xlu1 %v2950_v1, %s2744_s3  ;;  %1155 = vrot.lane.b32.xlu0 %v2946_v0, %s2744_s3  ;;  %v3183_v58 = vrot.slane %v3176_v7, %v3023_v5  ;;  %s2752_s3 = smov 77   ;;  %vm938_vm11 = vcmp.lt.s32.totalorder %v3018_v4, 115 }
  0xfb   : > { %v3187_v59 = vrot.slane %v3178_v54, %v3023_v5 }
  0xfc   : > { %v682_v15 = vpop.permute.xlu1 %681  ;;  %v680_v16 = vpop.permute.xlu0 %679  ;;  %v2277_v18 = vpack.c.bf16 %v678_v14, %v661_v12  ;;  %v2279_v19 = vpack.c.bf16 %v677_v13, %v660_v2 }
  0xfd   : > { %v685_v21 = vsel %vm683_vm12, %v682_v15, %v680_v16  ;;  %v684_v24 = vsel %vm683_vm12, %v680_v16, %v682_v15  ;;  %v2750_v15 = vmov 0   ;;  %vm955_vm12 = vcmp.lt.s32.totalorder %v3018_v4, 114 }
  0xfe   : > { %1174 = vrot.lane.b32.xlu1 %v2950_v1, %s2745_s14  ;;  %1172 = vrot.lane.b32.xlu0 %v2946_v0, %s2745_s14  ;;  %v694_v28 = vmul.f32 %v689_v3, %v685_v21  ;;  %v695_v8 = vmul.f32 %v693_v20, %v684_v24  ;;  %v3221_v24 = vrot.slane %v3178_v54, %v3047_v17 }
  0xff   : > { %2278 = vmatprep.subr.bf16.mxu0 %v2277_v18  ;;  %2538 = vset.pattern.permute.xlu0 %v2750_v15 }
 0x100   : > { %2280 = vmatpush1.bf16.msra.mxu0 %v2279_v19  ;;  %v699_v26 = vpop.permute.xlu1 %698  ;;  %v697_v27 = vpop.permute.xlu0 %696  ;;  %2539 = vset.pattern.permute.xlu1 %v2750_v15  ;;  %v3257_v15 = vrot.slane %v3176_v7, %v3100_v11 }
 0x101   : > { %v701_v29 = vsel %vm700_vm13, %v697_v27, %v699_v26  ;;  %v702_v30 = vsel %vm700_vm13, %v699_v26, %v697_v27  ;;  %v808_v26 = vrot.slane %v3176_v7, %v3054_v25  ;;  %v812_v27 = vrot.slane %v3178_v54, %v3054_v25 }
 0x102   : > { %v711_v32 = vmul.f32 %v706_v22, %v702_v30  ;;  %v712_v33 = vmul.f32 %v710_v23, %v701_v29  ;;  %1191 = vrot.lane.b32.xlu1 %v2950_v1, %s2746_s27  ;;  %1189 = vrot.lane.b32.xlu0 %v2946_v0, %s2746_s27  ;;  %v3217_v23 = vrot.slane %v3176_v7, %v3047_v17  ;;  %vm972_vm13 = vcmp.lt.s32.totalorder %v3018_v4, 113 }
 0x104   : > { %v716_v34 = vpop.permute.xlu1 %715  ;;  %v714_v35 = vpop.permute.xlu0 %713  ;;  %v2281_v36 = vpack.c.bf16 %v712_v33, %v695_v8  ;;  %v2283_v37 = vpack.c.bf16 %v711_v32, %v694_v28  ;;  %v1295_v32 = vld [vmem:[%s3815_s6] sm:$0xff] }
 0x105   : > { %v719_v40 = vsel %vm717_vm14, %v716_v34, %v714_v35  ;;  %v718_v44 = vsel %vm717_vm14, %v714_v35, %v716_v34  ;;  %vm989_vm14 = vcmp.lt.s32.totalorder %v3018_v4, 112 }
 0x106   : > { %1208 = vrot.lane.b32.xlu1 %v2950_v1, %s2747_s15  ;;  %1206 = vrot.lane.b32.xlu0 %v2946_v0, %s2747_s15  ;;  %v728_v48 = vmul.f32 %v723_v38, %v719_v40  ;;  %v729_v51 = vmul.f32 %v727_v39, %v718_v44  ;;  %v825_v44 = vrot.slane %v3176_v7, %v3075_v43 }
 0x107   : > { %2282 = vmatprep.subr.bf16.mxu0 %v2281_v36 }
 0x108   : > { %2284 = vmatpush1.bf16.msra.mxu0 %v2283_v37  ;;  %v733_v45 = vpop.permute.xlu1 %732  ;;  %v731_v46 = vpop.permute.xlu0 %730 }
 0x109   : > { %v735_v49 = vsel %vm734_vm15, %v731_v46, %v733_v45  ;;  %v736_v50 = vsel %vm734_vm15, %v733_v45, %v731_v46  ;;  %v829_v45 = vrot.slane %v3178_v54, %v3075_v43  ;;  %v842_v46 = vrot.slane %v3176_v7, %v3080_v47 }
 0x10a   : > { %v745_v52 = vmul.f32 %v740_v41, %v736_v50  ;;  %v746_v53 = vmul.f32 %v744_v42, %v735_v49  ;;  %1225 = vrot.lane.b32.xlu1 %v2950_v1, %s2748_s16  ;;  %1223 = vrot.lane.b32.xlu0 %v2946_v0, %s2748_s16  ;;  %vm1006_vm15 = vcmp.lt.s32.totalorder %v3018_v4, 111 }
 0x10c   : > { %v750_v31 = vpop.permute.xlu1 %749  ;;  %v748_v55 = vpop.permute.xlu0 %747  ;;  %v2285_v56 = vpack.c.bf16 %v746_v53, %v729_v51  ;;  %v2287_v57 = vpack.c.bf16 %v745_v52, %v728_v48  ;;  %v846_v48 = vrot.slane %v3178_v54, %v3080_v47 }
 0x10d   : > { %v753_v60 = vsel %vm751_vm0, %v750_v31, %v748_v55  ;;  %v752_v2 = vsel %vm751_vm0, %v748_v55, %v750_v31 }
 0x10e   : > { %1242 = vrot.lane.b32.xlu1 %v2950_v1, %s2749_s30  ;;  %1240 = vrot.lane.b32.xlu0 %v2946_v0, %s2749_s30  ;;  %v762_v12 = vmul.f32 %v3183_v58, %v753_v60  ;;  %v763_v16 = vmul.f32 %v3187_v59, %v752_v2 }
 0x10f   : > { %2286 = vmatprep.subr.bf16.mxu0 %v2285_v56 }
 0x110   : > { %2288 = vmatpush1.bf16.msra.mxu0 %v2287_v57  ;;  %v767_v9 = vpop.permute.xlu1 %766  ;;  %v765_v10 = vpop.permute.xlu0 %764 }
 0x111   : > { %v769_v13 = vsel %vm768_vm1, %v765_v10, %v767_v9  ;;  %v770_v14 = vsel %vm768_vm1, %v767_v9, %v765_v10 }
 0x112   : > { %v779_v18 = vmul.f32 %v3196_v61, %v770_v14  ;;  %v780_v19 = vmul.f32 %v3200_v62, %v769_v13  ;;  %1259 = vrot.lane.b32.xlu1 %v2950_v1, %s2751_s13  ;;  %1257 = vrot.lane.b32.xlu0 %v2946_v0, %s2751_s13  ;;  %v859_v13 = vrot.slane %v3176_v7, %v3095_v63  ;;  %s2754_s13 = smov [#allocation10]  }
 0x113   : > { %v863_v14 = vrot.slane %v3178_v54, %v3095_v63 }
 0x114   : > { %v784_v3 = vpop.permute.xlu1 %783  ;;  %v782_v20 = vpop.permute.xlu0 %781  ;;  %v2289_v21 = vpack.c.bf16 %v780_v19, %v763_v16  ;;  %v2291_v22 = vpack.c.bf16 %v779_v18, %v762_v12  ;;  %v3261_v16 = vrot.slane %v3178_v54, %v3100_v11  ;;  %v3263_v18 = vld [vmem:[#allocation5 + $0x30] sm:$0xff]  ;;  %v3265_v19 = vld [vmem:[#allocation5 + $0x38] sm:$0xff] }
 0x115   : > { %v786_v28 = vsel %vm785_vm2, %v782_v20, %v784_v3  ;;  %v787_v29 = vsel %vm785_vm2, %v784_v3, %v782_v20 }
 0x116   : > { %2290 = vmatprep.subr.bf16.mxu0 %v2289_v21  ;;  %1276 = vrot.lane.b32.xlu1 %v2950_v1, %s2752_s3  ;;  %v796_v35 = vmul.f32 %v3217_v23, %v787_v29  ;;  %v797_v36 = vmul.f32 %v3221_v24, %v786_v28  ;;  %v3274_v28 = vrot.slane %v3263_v18, %v3026_v6 }
 0x117   : > { %2292 = vmatpush1.bf16.msra.mxu0 %v2291_v22  ;;  %1274 = vrot.lane.b32.xlu0 %v2946_v0, %s2752_s3  ;;  %v3278_v29 = vrot.slane %v3265_v19, %v3026_v6  ;;  %s3450_s3 = sand.u32 1, %s2690_s21  }
 0x118   : > { %v801_v30 = vpop.permute.xlu1 %800  ;;  %v799_v8 = vpop.permute.xlu0 %798  ;;  %s2234_s14 = sshll.u32 %s3450_s3, 4  ;;  %s2080_s16 = scalar_lea.sflag [#allocation7], %s3450_s3 }
 0x119   : > { %v803_v33 = vsel %vm802_vm3, %v799_v8, %v801_v30  ;;  %v804_v34 = vsel %vm802_vm3, %v801_v30, %v799_v8  ;;  %vm1023_vm3 = vcmp.lt.s32.totalorder %v3018_v4, 110  ;;  %s3454_s27 = scalar_lea.vmem [#allocation10], %s2234_s14  ;;  %s2600_s14 = sshll.u32 %s2754_s13, 4  ;;  %s2601_s14 = int_to_ptr.vmem [resolvable:$false] %s2600_s14 }
 0x11a   : > { %v813_v37 = vmul.f32 %v808_v26, %v804_v34  ;;  %v814_v38 = vmul.f32 %v812_v27, %v803_v33  ;;  %s2099_s15 = sshll.u32 %s3454_s27, 4  ;;  %s2100_s15 = int_to_ptr.vmem [resolvable:$true] %s2099_s15 }
 0x11b   : > { %1298 = vperm.xlu0 %2538, %v1295_v32   ;;  %s2596_s30 = scalar_lea.vmem %s2100_s15, 256  ;;  %p2603_p4 = scmp.lt.s32.totalorder %s2100_s15, %s2601_s14 }
 0x11c   : > { %v818_v39 = vpop.permute.xlu1 %817  ;;  %v816_v40 = vpop.permute.xlu0 %815  ;;  %v2293_v41 = vpack.c.bf16 %v814_v38, %v797_v36  ;;  %v2295_v42 = vpack.c.bf16 %v813_v37, %v796_v35  ;;  %p2597_p12 = scmp.ne.s32.totalorder %s2100_s15, %s2596_s30 }
 0x11d   : > { %v820_v49 = vsel %vm819_vm4, %v816_v40, %v818_v39  ;;  %v821_v50 = vsel %vm819_vm4, %v818_v39, %v816_v40  ;;  %vm1301_vm4 = vcmask 64512  }
 0x11e   : > { %2294 = vmatprep.subr.bf16.mxu0 %v2293_v41  ;;  %v830_v55 = vmul.f32 %v825_v44, %v821_v50  ;;  %v831_v56 = vmul.f32 %v829_v45, %v820_v49  ;;  %v914_v49 = vrot.slane %v3265_v19, %v3047_v17  ;;  %v927_v50 = vrot.slane %v3263_v18, %v3054_v25  ;;  %p2598_p2 = pnand %p2597_p12, %p3842_p1 }
 0x11f   : > { %2296 = vmatpush1.bf16.msra.mxu0 %v2295_v42 }
 0x120   : > { %v835_v51 = vpop.permute.xlu1 %834  ;;  %v833_v52 = vpop.permute.xlu0 %832  ;;  %p2599_p3 = pneg %p2598_p2 }
 0x121   : > { %v837_v53 = vsel %vm836_vm5, %v833_v52, %v835_v51  ;;  %v838_v31 = vsel %vm836_vm5, %v835_v51, %v833_v52  ;;  %v931_v51 = vrot.slane %v3265_v19, %v3054_v25  ;;  %vm1040_vm5 = vcmp.lt.s32.totalorder %v3018_v4, 109 }
 0x122   : > { %v847_v57 = vmul.f32 %v842_v46, %v838_v31  ;;  %v848_v60 = vmul.f32 %v846_v48, %v837_v53  ;;  %v910_v48 = vrot.slane %v3263_v18, %v3047_v17 }
 0x124   : > { %v852_v2 = vpop.permute.xlu1 %851  ;;  %v850_v9 = vpop.permute.xlu0 %849  ;;  %v2297_v10 = vpack.c.bf16 %v848_v60, %v831_v56  ;;  %v2299_v12 = vpack.c.bf16 %v847_v57, %v830_v55 }
 0x125   : > { %v854_v3 = vsel %vm853_vm6, %v850_v9, %v852_v2  ;;  %v855_v20 = vsel %vm853_vm6, %v852_v2, %v850_v9  ;;  %vm1057_vm6 = vcmp.lt.s32.totalorder %v3018_v4, 99 }
 0x126   : > { %2298 = vmatprep.subr.bf16.mxu0 %v2297_v10  ;;  %v864_v30 = vmul.f32 %v859_v13, %v855_v20  ;;  %v865_v8 = vmul.f32 %v863_v14, %v854_v3  ;;  %v944_v14 = vrot.slane %v3263_v18, %v3075_v43  ;;  %v948_v3 = vrot.slane %v3265_v19, %v3075_v43 }
 0x127   : > { %2300 = vmatpush1.bf16.msra.mxu0 %v2299_v12  ;;  %v961_v20 = vrot.slane %v3263_v18, %v3080_v47 }
 0x128   : > { %v869_v21 = vpop.permute.xlu1 %868  ;;  %v867_v22 = vpop.permute.xlu0 %866 }
 0x129   : > { %v871_v26 = vsel %vm870_vm7, %v867_v22, %v869_v21  ;;  %v872_v27 = vsel %vm870_vm7, %v869_v21, %v867_v22  ;;  %v965_v21 = vrot.slane %v3265_v19, %v3080_v47 }
 0x12a   : > { %v881_v32 = vmul.f32 %v3257_v15, %v872_v27  ;;  %v882_v33 = vmul.f32 %v3261_v16, %v871_v26 }
 0x12c   : > { %v886_v34 = vpop.permute.xlu1 %885  ;;  %v884_v35 = vpop.permute.xlu0 %883  ;;  %v2301_v36 = vpack.c.bf16 %v882_v33, %v865_v8  ;;  %v2303_v37 = vpack.c.bf16 %v881_v32, %v864_v30 }
 0x12d   : > { %v888_v38 = vsel %vm887_vm8, %v884_v35, %v886_v34  ;;  %v889_v39 = vsel %vm887_vm8, %v886_v34, %v884_v35 }
 0x12e   : > { %v898_v40 = vmul.f32 %v3274_v28, %v888_v38  ;;  %v899_v41 = vmul.f32 %v3278_v29, %v889_v39  ;;  %2302 = vmatprep.subr.bf16.mxu0 %v2301_v36 }
 0x12f   : > { %2304 = vmatpush1.bf16.msra.mxu0 %v2303_v37 }
 0x130   : > { %v903_v42 = vpop.permute.xlu1 %902  ;;  %v901_v44 = vpop.permute.xlu0 %900  ;;  %v2305_v45 = vpack.c.bf16 %v899_v41, %v2950_v1  ;;  %v2307_v46 = vpack.c.bf16 %v898_v40, %v2946_v0  ;;  %v3313_v41 = vrot.slane %v3263_v18, %v3095_v63 }
 0x131   : > { %v905_v52 = vsel %vm904_vm9, %v901_v44, %v903_v42  ;;  %v906_v53 = vsel %vm904_vm9, %v903_v42, %v901_v44  ;;  %v3317_v42 = vrot.slane %v3265_v19, %v3095_v63  ;;  %v3322_v44 = vrot.slane %v3263_v18, %v3100_v11 }
 0x132   : > { %2306 = vmatprep.subr.bf16.mxu0 %v2305_v45  ;;  %v915_v56 = vmul.f32 %v910_v48, %v905_v52  ;;  %v916_v57 = vmul.f32 %v914_v49, %v906_v53  ;;  %v3326_v45 = vrot.slane %v3265_v19, %v3100_v11  ;;  %vm1074_vm9 = vcmp.lt.s32.totalorder %v3018_v4, 98 }
 0x133   : > { %2308 = vmatpush1.bf16.msra.mxu0 %v2307_v46 }
 0x134   : > { %v920_v1 = vpop.permute.xlu1 %919  ;;  %v918_v0 = vpop.permute.xlu0 %917 }
 0x135   : > { %v922_v31 = vsel %vm921_vm10, %v918_v0, %v920_v1  ;;  %v923_v55 = vsel %vm921_vm10, %v920_v1, %v918_v0  ;;  %vm1091_vm10 = vcmp.lt.s32.totalorder %v3018_v4, 97 }
 0x136   : > { %v932_v60 = vmul.f32 %v927_v50, %v922_v31  ;;  %v933_v2 = vmul.f32 %v931_v51, %v923_v55  ;;  %v3340_v55 = vld [vmem:[#allocation5 + $0x40] sm:$0xff] }
 0x138   : > { %v937_v9 = vpop.permute.xlu1 %936  ;;  %v935_v10 = vpop.permute.xlu0 %934  ;;  %v2309_v12 = vpack.c.bf16 %v933_v2, %v916_v57  ;;  %v2311_v13 = vpack.c.bf16 %v932_v60, %v915_v56  ;;  %v3342_v56 = vld [vmem:[#allocation5 + $0x48] sm:$0xff] }
 0x139   : > { %v939_v22 = vsel %vm938_vm11, %v935_v10, %v937_v9  ;;  %v940_v26 = vsel %vm938_vm11, %v937_v9, %v935_v10  ;;  %v3347_v10 = vrot.slane %v3340_v55, %v3023_v5  ;;  %vm1108_vm11 = vcmp.lt.s32.totalorder %v3018_v4, 96 }
 0x13a   : > { %2310 = vmatprep.subr.bf16.mxu0 %v2309_v12  ;;  %v949_v33 = vmul.f32 %v944_v14, %v939_v22  ;;  %v950_v34 = vmul.f32 %v948_v3, %v940_v26  ;;  %v3351_v12 = vrot.slane %v3342_v56, %v3023_v5  ;;  %v1033_v14 = vrot.slane %v3342_v56, %v3026_v6 }
 0x13b   : > { %2312 = vmatpush1.bf16.msra.mxu0 %v2311_v13  ;;  %v1029_v13 = vrot.slane %v3340_v55, %v3026_v6 }
 0x13c   : > { %v954_v27 = vpop.permute.xlu1 %953  ;;  %v952_v30 = vpop.permute.xlu0 %951 }
 0x13d   : > { %v956_v8 = vsel %vm955_vm12, %v952_v30, %v954_v27  ;;  %v957_v32 = vsel %vm955_vm12, %v954_v27, %v952_v30  ;;  %v1294_v27 = vld [vmem:[#allocation8 + $0x18] sm:$0xff]  ;;  %vm1125_vm12 = vcmp.lt.s32.totalorder %v3018_v4, 95 }
 0x13e   : > { %v966_v35 = vmul.f32 %v961_v20, %v956_v8  ;;  %v967_v36 = vmul.f32 %v965_v21, %v957_v32  ;;  %v1291_v21 = vld [vmem:[#allocation8] sm:$0xff] }
 0x140   : > { %v971_v37 = vpop.permute.xlu1 %970  ;;  %v969_v38 = vpop.permute.xlu0 %968  ;;  %v2313_v39 = vpack.c.bf16 %v967_v36, %v950_v34  ;;  %v2315_v40 = vpack.c.bf16 %v966_v35, %v949_v33 }
 0x141   : > { %v973_v46 = vsel %vm972_vm13, %v969_v38, %v971_v37  ;;  %v974_v48 = vsel %vm972_vm13, %v971_v37, %v969_v38 }
 0x142   : > { %2314 = vmatprep.subr.bf16.mxu0 %v2313_v39  ;;  %v983_v53 = vmul.f32 %v3313_v41, %v973_v46  ;;  %v984_v1 = vmul.f32 %v3317_v42, %v974_v48  ;;  %v1050_v46 = vrot.slane %v3342_v56, %v3047_v17  ;;  %v1063_v48 = vrot.slane %v3340_v55, %v3054_v25 }
 0x143   : > { %2316 = vmatpush1.bf16.msra.mxu0 %v2315_v40  ;;  %v1046_v40 = vrot.slane %v3340_v55, %v3047_v17 }
 0x144   : > { %v988_v49 = vpop.permute.xlu1 %987  ;;  %v986_v50 = vpop.permute.xlu0 %985 }
 0x145   : > { %v990_v51 = vsel %vm989_vm14, %v986_v50, %v988_v49  ;;  %v991_v52 = vsel %vm989_vm14, %v988_v49, %v986_v50  ;;  %v1067_v49 = vrot.slane %v3342_v56, %v3054_v25 }
 0x146   : > { %v1000_v0 = vmul.f32 %v3322_v44, %v990_v51  ;;  %v1001_v31 = vmul.f32 %v3326_v45, %v991_v52 }
 0x148   : > { %v1005_v57 = vpop.permute.xlu1 %1004  ;;  %v1003_v60 = vpop.permute.xlu0 %1002  ;;  %v2317_v2 = vpack.c.bf16 %v1001_v31, %v984_v1  ;;  %v2319_v9 = vpack.c.bf16 %v1000_v0, %v983_v53 }
 0x149   : > { %v1007_v3 = vsel %vm1006_vm15, %v1003_v60, %v1005_v57  ;;  %v1008_v20 = vsel %vm1006_vm15, %v1005_v57, %v1003_v60 }
 0x14a   : > { %2318 = vmatprep.subr.bf16.mxu0 %v2317_v2  ;;  %v1017_v32 = vmul.f32 %v3347_v10, %v1007_v3  ;;  %v1018_v33 = vmul.f32 %v3351_v12, %v1008_v20  ;;  %v1080_v20 = vrot.slane %v3340_v55, %v3075_v43 }
 0x14b   : > { %2320 = vmatpush1.bf16.msra.mxu0 %v2319_v9 }
 0x14c   : > { %v1022_v22 = vpop.permute.xlu1 %1021  ;;  %v1020_v26 = vpop.permute.xlu0 %1019 }
 0x14d   : > { %v1024_v30 = vsel %vm1023_vm3, %v1020_v26, %v1022_v22  ;;  %v1025_v8 = vsel %vm1023_vm3, %v1022_v22, %v1020_v26  ;;  %v1097_v22 = vrot.slane %v3340_v55, %v3080_v47  ;;  %v1101_v26 = vrot.slane %v3342_v56, %v3080_v47 }
 0x14e   : > { %v1034_v34 = vmul.f32 %v1029_v13, %v1024_v30  ;;  %v1035_v35 = vmul.f32 %v1033_v14, %v1025_v8  ;;  %1370 = vmatmul.mubr.f32.vlgmr.msra.gmra.mrb[0].mxu0 %v1291_v21  ;;  %v1084_v21 = vrot.slane %v3342_v56, %v3075_v43  ;;  %vm1142_vm3 = vcmp.lt.s32.totalorder %v3018_v4, 94 }
 0x14f   : > { %2240 = vmatprep.mubr.msk.f32.mxu0 %vm1301_vm4, %v1294_v27 }
 0x150   : > { %v2323_v36 = vpack.c.bf16 %v1034_v34, %v1017_v32  ;;  %v1039_v37 = vpop.permute.xlu1 %1038  ;;  %v1037_v38 = vpop.permute.xlu0 %1036  ;;  %v2321_v39 = vpack.c.bf16 %v1035_v35, %v1018_v33 }
 0x151   : > { %v1041_v50 = vsel %vm1040_vm5, %v1037_v38, %v1039_v37  ;;  %v1042_v51 = vsel %vm1040_vm5, %v1039_v37, %v1037_v38  ;;  %vm1159_vm5 = vcmp.lt.s32.totalorder %v3018_v4, 93 }
 0x152   : > { %2322 = vmatprep.subr.bf16.mxu0 %v2321_v39  ;;  %v1051_v31 = vmul.f32 %v1046_v40, %v1041_v50  ;;  %v1052_v57 = vmul.f32 %v1050_v46, %v1042_v51  ;;  %v1118_v50 = vrot.slane %v3342_v56, %v3095_v63  ;;  %v1131_v51 = vrot.slane %v3340_v55, %v3100_v11 }
 0x153   : > { %2324 = vmatpush1.bf16.msra.mxu0 %v2323_v36 }
 0x154   : > { %v1056_v52 = vpop.permute.xlu1 %1055  ;;  %v1054_v53 = vpop.permute.xlu0 %1053 }
 0x155   : > { %v1058_v1 = vsel %vm1057_vm6, %v1054_v53, %v1056_v52  ;;  %v1059_v0 = vsel %vm1057_vm6, %v1056_v52, %v1054_v53  ;;  %v1135_v52 = vrot.slane %v3342_v56, %v3100_v11  ;;  %vm1176_vm6 = vcmp.lt.s32.totalorder %v3018_v4, 83 }
 0x156   : > { %v1068_v60 = vmul.f32 %v1063_v48, %v1058_v1  ;;  %v1069_v2 = vmul.f32 %v1067_v49, %v1059_v0  ;;  %v1114_v49 = vrot.slane %v3340_v55, %v3095_v63 }
 0x158   : > { %v2327_v9 = vpack.c.bf16 %v1068_v60, %v1051_v31  ;;  %v1073_v13 = vpop.permute.xlu1 %1072  ;;  %v1071_v14 = vpop.permute.xlu0 %1070  ;;  %v2325_v3 = vpack.c.bf16 %v1069_v2, %v1052_v57 }
 0x159   : > { %v1075_v27 = vsel %vm1074_vm9, %v1071_v14, %v1073_v13  ;;  %v1076_v30 = vsel %vm1074_vm9, %v1073_v13, %v1071_v14  ;;  %vm1193_vm9 = vcmp.lt.s32.totalorder %v3018_v4, 82 }
 0x15a   : > { %2326 = vmatprep.subr.bf16.mxu0 %v2325_v3  ;;  %v1085_v35 = vmul.f32 %v1080_v20, %v1075_v27  ;;  %v1086_v36 = vmul.f32 %v1084_v21, %v1076_v30  ;;  %v3395_v3 = vld [vmem:[#allocation5 + $0x50] sm:$0xff]  ;;  %v3397_v20 = vld [vmem:[#allocation5 + $0x58] sm:$0xff] }
 0x15b   : > { %2328 = vmatpush1.bf16.msra.mxu0 %v2327_v9  ;;  %v1152_v27 = vrot.slane %v3397_v20, %v3023_v5  ;;  %v1165_v30 = vrot.slane %v3395_v3, %v3026_v6 }
 0x15c   : > { %v1090_v8 = vpop.permute.xlu1 %1089  ;;  %v1088_v32 = vpop.permute.xlu0 %1087 }
 0x15d   : > { %v1092_v33 = vsel %vm1091_vm10, %v1088_v32, %v1090_v8  ;;  %v1093_v34 = vsel %vm1091_vm10, %v1090_v8, %v1088_v32  ;;  %v1169_v8 = vrot.slane %v3397_v20, %v3026_v6  ;;  %vm1210_vm10 = vcmp.lt.s32.totalorder %v3018_v4, 81 }
 0x15e   : > { %v1102_v37 = vmul.f32 %v1097_v22, %v1092_v33  ;;  %v1103_v38 = vmul.f32 %v1101_v26, %v1093_v34  ;;  %v1148_v26 = vrot.slane %v3395_v3, %v3023_v5 }
 0x160   : > { %v2331_v39 = vpack.c.bf16 %v1102_v37, %v1085_v35  ;;  %v1107_v40 = vpop.permute.xlu1 %1106  ;;  %v1105_v46 = vpop.permute.xlu0 %1104  ;;  %v2329_v48 = vpack.c.bf16 %v1103_v38, %v1086_v36 }
 0x161   : > { %v1109_v53 = vsel %vm1108_vm11, %v1105_v46, %v1107_v40  ;;  %v1110_v1 = vsel %vm1108_vm11, %v1107_v40, %v1105_v46  ;;  %vm1227_vm11 = vcmp.lt.s32.totalorder %v3018_v4, 80 }
 0x162   : > { %2330 = vmatprep.subr.bf16.mxu0 %v2329_v48  ;;  %v1119_v2 = vmul.f32 %v1114_v49, %v1109_v53  ;;  %v1120_v9 = vmul.f32 %v1118_v50, %v1110_v1  ;;  %v1199_v53 = vrot.slane %v3395_v3, %v3054_v25  ;;  %v1203_v1 = vrot.slane %v3397_v20, %v3054_v25 }
 0x163   : > { %2332 = vmatpush1.bf16.msra.mxu0 %v2331_v39  ;;  %v1216_v25 = vrot.slane %v3395_v3, %v3075_v43 }
 0x164   : > { %v1124_v0 = vpop.permute.xlu1 %1123  ;;  %v1122_v31 = vpop.permute.xlu0 %1121 }
 0x165   : > { %v1126_v57 = vsel %vm1125_vm12, %v1122_v31, %v1124_v0  ;;  %v1127_v60 = vsel %vm1125_vm12, %v1124_v0, %v1122_v31  ;;  %vm1244_vm12 = vcmp.lt.s32.totalorder %v3018_v4, 79 }
 0x166   : > { %v1136_v13 = vmul.f32 %v1131_v51, %v1126_v57  ;;  %v1137_v14 = vmul.f32 %v1135_v52, %v1127_v60  ;;  %v1182_v51 = vrot.slane %v3395_v3, %v3047_v17  ;;  %v1186_v52 = vrot.slane %v3397_v20, %v3047_v17 }
 0x168   : > { %v2335_v21 = vpack.c.bf16 %v1136_v13, %v1119_v2  ;;  %v1141_v55 = vpop.permute.xlu1 %1140  ;;  %v1139_v56 = vpop.permute.xlu0 %1138  ;;  %v2333_v22 = vpack.c.bf16 %v1137_v14, %v1120_v9 }
 0x169   : > { %v1143_v32 = vsel %vm1142_vm3, %v1139_v56, %v1141_v55  ;;  %v1144_v33 = vsel %vm1142_vm3, %v1141_v55, %v1139_v56  ;;  %vm1261_vm3 = vcmp.lt.s32.totalorder %v3018_v4, 78 }
 0x16a   : > { %2334 = vmatprep.subr.bf16.mxu0 %v2333_v22  ;;  %v1153_v38 = vmul.f32 %v1148_v26, %v1143_v32  ;;  %v1154_v39 = vmul.f32 %v1152_v27, %v1144_v33  ;;  %v1220_v27 = vrot.slane %v3397_v20, %v3075_v43 }
 0x16b   : > { %2336 = vmatpush1.bf16.msra.mxu0 %v2335_v21 }
 0x16c   : > { %v1158_v34 = vpop.permute.xlu1 %1157  ;;  %v1156_v35 = vpop.permute.xlu0 %1155 }
 0x16d   : > { %v1160_v36 = vsel %vm1159_vm5, %v1156_v35, %v1158_v34  ;;  %v1161_v37 = vsel %vm1159_vm5, %v1158_v34, %v1156_v35  ;;  %vm1278_vm5 = vcmp.lt.s32.totalorder %v3018_v4, 77 }
 0x16e   : > { %v1170_v40 = vmul.f32 %v1165_v30, %v1160_v36  ;;  %v1171_v5 = vmul.f32 %v1169_v8, %v1161_v37  ;;  %v1233_v30 = vrot.slane %v3395_v3, %v3080_v47  ;;  %v1237_v8 = vrot.slane %v3397_v20, %v3080_v47 }
 0x16f   : > { %v1250_v47 = vrot.slane %v3395_v3, %v3095_v63 }
 0x170   : > { %v2339_v46 = vpack.c.bf16 %v1170_v40, %v1153_v38  ;;  %v1175_v48 = vpop.permute.xlu1 %1174  ;;  %v1173_v49 = vpop.permute.xlu0 %1172  ;;  %v2337_v50 = vpack.c.bf16 %v1171_v5, %v1154_v39 }
 0x171   : > { %v1177_v0 = vsel %vm1176_vm6, %v1173_v49, %v1175_v48  ;;  %v1178_v31 = vsel %vm1176_vm6, %v1175_v48, %v1173_v49 }
 0x172   : > { %2338 = vmatprep.subr.bf16.mxu0 %v2337_v50  ;;  %v1187_v13 = vmul.f32 %v1182_v51, %v1177_v0  ;;  %v1188_v14 = vmul.f32 %v1186_v52, %v1178_v31  ;;  %v1254_v50 = vrot.slane %v3397_v20, %v3095_v63  ;;  %v1267_v51 = vrot.slane %v3395_v3, %v3100_v11  ;;  %v2239_v3 = vld [vmem:[#allocation5 + $0x68] ss:$0 sm:$0xff] }
 0x173   : > { %2340 = vmatpush1.bf16.msra.mxu0 %v2339_v46  ;;  %v1271_v52 = vrot.slane %v3397_v20, %v3100_v11 }
 0x174   : > { %v1192_v57 = vpop.permute.xlu1 %1191  ;;  %v1190_v60 = vpop.permute.xlu0 %1189 }
 0x175   : > { %v1194_v2 = vsel %vm1193_vm9, %v1190_v60, %v1192_v57  ;;  %v1195_v9 = vsel %vm1193_vm9, %v1192_v57, %v1190_v60 }
 0x176   : > { %v1204_v21 = vmul.f32 %v1199_v53, %v1194_v2  ;;  %v1205_v17 = vmul.f32 %v1203_v1, %v1195_v9 }
 0x178   : > { %v2343_v55 = vpack.c.bf16 %v1204_v21, %v1187_v13  ;;  %v1209_v56 = vpop.permute.xlu1 %1208  ;;  %v1207_v22 = vpop.permute.xlu0 %1206  ;;  %v2341_v26 = vpack.c.bf16 %v1205_v17, %v1188_v14  ;;  %v2238_v17 = vld [vmem:[#allocation5 + $0x60] ss:$0 sm:$0xff] }
 0x179   : > { %v1211_v32 = vsel %vm1210_vm10, %v1207_v22, %v1209_v56  ;;  %v1212_v33 = vsel %vm1210_vm10, %v1209_v56, %v1207_v22 }
 0x17a   : > { %2342 = vmatprep.subr.bf16.mxu0 %v2341_v26  ;;  %v1221_v38 = vmul.f32 %v1216_v25, %v1211_v32  ;;  %v1222_v39 = vmul.f32 %v1220_v27, %v1212_v33  ;;  %v1293_v27 = vld [vmem:[#allocation8 + $0x10] sm:$0xff] }
 0x17b   : > { %2344 = vmatpush1.bf16.msra.mxu0 %v2343_v55 }
 0x17c   : > { %v1226_v34 = vpop.permute.xlu1 %1225  ;;  %v1224_v35 = vpop.permute.xlu0 %1223 }
 0x17d   : > { %v1228_v36 = vsel %vm1227_vm11, %v1224_v35, %v1226_v34  ;;  %v1229_v37 = vsel %vm1227_vm11, %v1226_v34, %v1224_v35 }
 0x17e   : > { %v1238_v40 = vmul.f32 %v1233_v30, %v1228_v36  ;;  %v1239_v43 = vmul.f32 %v1237_v8, %v1229_v37  ;;  %v2753_v30 = vmov 0.0   ;;  %v1450_v8 = vld [vmem:[%s3817_s8] sm:$0xff] }
 0x17f   : > { %1523 = vmatprep.mubr.f32.mxu1 %v2753_v30  ;;  %1453 = vperm.xlu1 %2539, %v1450_v8  }
 0x180   : > { %v2347_v5 = vpack.c.bf16 %v1238_v40, %v1221_v38  ;;  %v1243_v46 = vpop.permute.xlu1 %1242  ;;  %v1241_v48 = vpop.permute.xlu0 %1240  ;;  %v2345_v49 = vpack.c.bf16 %v1239_v43, %v1222_v39  ;;  %v1449_v39 = vld [vmem:[%s3816_s7] sm:$0xff] }
 0x181   : > { %v1245_v53 = vsel %vm1244_vm12, %v1241_v48, %v1243_v46  ;;  %v1246_v1 = vsel %vm1244_vm12, %v1243_v46, %v1241_v48 }
 0x182   : > { %2346 = vmatprep.subr.bf16.mxu0 %v2345_v49  ;;  %v1255_v2 = vmul.f32 %v1250_v47, %v1245_v53  ;;  %v1256_v9 = vmul.f32 %v1254_v50, %v1246_v1  ;;  %v1564_v50 = vsub.f32 1.0, %v3263_v18  ;;  %v1543_v53 = vsub.f32 1.0, %v3178_v54 }
 0x183   : > { %2348 = vmatpush1.bf16.msra.mxu0 %v2347_v5 }
 0x184   : > { %v1260_v0 = vpop.permute.xlu1 %1259  ;;  %v1258_v31 = vpop.permute.xlu0 %1257  ;;  %v1569_v1 = vrot.slane %v1564_v50, %v3100_v11 }
 0x185   : > { %v1262_v57 = vsel %vm1261_vm3, %v1258_v31, %v1260_v0  ;;  %v1263_v60 = vsel %vm1261_vm3, %v1260_v0, %v1258_v31 }
 0x186   : > { %v1272_v13 = vmul.f32 %v1267_v51, %v1262_v57  ;;  %v1273_v63 = vmul.f32 %v1271_v52, %v1263_v60  ;;  %v1565_v51 = vsub.f32 1.0, %v3265_v19  ;;  %v1542_v52 = vsub.f32 1.0, %v3176_v7 }
 0x187   : > { %v1551_v19 = vrot.slane %v1543_v53, %v3026_v6 }
 0x188   : > { %v2351_v14 = vpack.c.bf16 %v1272_v13, %v1255_v2  ;;  %v1277_v21 = vpop.permute.xlu1 %1276  ;;  %v2349_v55 = vpack.c.bf16 %v1273_v63, %v1256_v9  ;;  %v1573_v0 = vrot.slane %v1565_v51, %v3100_v11  ;;  %v1547_v60 = vrot.slane %v1542_v52, %v3026_v6 }
 0x189   : > { %v1275_v56 = vpop.permute.xlu0 %1274 }
 0x18a   : > { %v1279_v20 = vsel %vm1278_vm5, %v1275_v56, %v1277_v21  ;;  %v1280_v22 = vsel %vm1278_vm5, %v1277_v21, %v1275_v56  ;;  %2350 = vmatprep.subr.bf16.mxu0 %v2349_v55 }
 0x18b   : > { %v1289_v26 = vmul.f32 %v2238_v17, %v1279_v20  ;;  %v1290_v25 = vmul.f32 %v2239_v3, %v1280_v22  ;;  %2352 = vmatpush1.bf16.msra.mxu0 %v2351_v14 }
 0x18d   : > { %1408 = vmatprep.subr.mxu0 %v1290_v25 }
 0x18f   : > { %1409 = vmatpush1.msra.mxu0 %v1289_v26 }
 0x190   : > { %1441 = vmatmul.mubr.f32.vlgmr.msra.gmra.mrb[0].mxu0 %v1293_v27 }
 0x19a   : > { %v1299_v32 = vpop.permute.xlu0 %1298 }
 0x1fe   : > { %v1454_v40 = vpop.permute.xlu1 %1453 }
 0x263   : > { %v1442_v33 = vpop.f32.mrb[0].mxu0 }
 0x264   : > { %v2417_v34 = vadd.f32 %v1442_v33, %v1299_v32  ;;  %v1444_v35 = vpop.f32.mrb[1].mxu0 }
 0x265   : > { %v2418_v36 = vadd.f32 %v1444_v35, %v1299_v32 }
 0x266   : > { %v1447_v38 = vmax.f32 %v2417_v34, 0.0 }
 0x267   : > { %v1448_v37 = vmax.f32 %v2418_v36, 0.0 }
 0x269   : > { %1459 = vmatprep.subr.mxu1 %v1448_v37 }
 0x26a   : > { %1460 = vmatpush1.msra.mxu1 %v1447_v38 }
 0x26b   : > { %2241 = vmatmul.mubr.msk.f32.vlgmr.msra.gmra.mrb[0].mxu1 %vm1301_vm4, %v1449_v39 }
 0x26c   : > { %1843 = vmatprep.mubr.f32.mxu1 %v2753_v30 }
 0x33e   : > { %v1525_v43 = vpop.f32.mrb[0].mxu1 }
 0x33f   : > { %v1526_v5 = vadd.f32 %v1525_v43, %v1454_v40  ;;  %v1527_v46 = vpop.f32.mrb[1].mxu1 }
 0x340   : > { %v1528_v48 = vadd.f32 %v1527_v46, %v1454_v40  ;;  %v1599_v46 = vrot.slane %v1542_v52, %v3100_v11 }
 0x341   : > { %v1530_v49 = vmax.f32 %v1526_v5, 0.0 }
 0x342   : > { %v1531_v47 = vmax.f32 %v1528_v48, 0.0  ;;  %v1603_v48 = vrot.slane %v1543_v53, %v3100_v11 }
 0x343   : > { %1556 = vrot.lane.b32.xlu1 %v1530_v49, %s2734_s18  ;;  %1532 = vst [vmem:[%s3454_s27] sm:$0xff] %v1530_v49  ;;  %v1574_v9 = vmul.f32 %v1569_v1, %v1530_v49  ;;  %v1580_v17 = vmul.f32 0.75, %v1530_v49  ;;  %v1552_v55 = vmul.f32 %v1547_v60, %v1530_v49  ;;  %v1619_v1 = vrot.slane %v1564_v50, %v3026_v6 }
 0x344   : > { %1558 = vrot.lane.b32.xlu0 %v1531_v47, %s2734_s18  ;;  %1533 = vst [vmem:[%s3454_s27 + $0x8] sm:$0xff] %v1531_v47  ;;  %v1575_v13 = vmul.f32 %v1573_v0, %v1531_v47  ;;  %v1581_v56 = vmul.f32 0.75, %v1531_v47  ;;  %v1553_v26 = vmul.f32 %v1551_v19, %v1531_v47  ;;  %v1623_v0 = vrot.slane %v1565_v51, %v3026_v6 }
 0x347   : > { %1534 = vrot.lane.b32.xlu1 %v1530_v49, %s2721_s5 }
 0x348   : > { %1536 = vrot.lane.b32.xlu0 %v1531_v47, %s2721_s5 }
 0x3b5   : > { %v1557_v31 = vpop.permute.xlu1 %1556 }
 0x3b6   : > { %v1559_v57 = vpop.permute.xlu0 %1558 }
 0x3b7   : > { %v1560_v2 = vsel %vm989_vm14, %v1557_v31, %v1559_v57  ;;  %v1561_v18 = vsel %vm989_vm14, %v1559_v57, %v1557_v31 }
 0x3b8   : > { %v1562_v7 = vmul.f32 %v1560_v2, %v3322_v44  ;;  %v1563_v54 = vmul.f32 %v1561_v18, %v3326_v45 }
 0x3b9   : > { %v1535_v63 = vpop.permute.xlu1 %1534 }
 0x3ba   : > { %v1576_v14 = vadd.f32 %v1574_v9, %v1562_v7  ;;  %v1577_v21 = vadd.f32 %v1575_v13, %v1563_v54  ;;  %v1537_v3 = vpop.permute.xlu0 %1536 }
 0x3bb   : > { %v1538_v20 = vsel %vm768_vm1, %v1535_v63, %v1537_v3  ;;  %v1539_v22 = vsel %vm768_vm1, %v1537_v3, %v1535_v63 }
 0x3bc   : > { %v1584_v25 = vmul.f32 0.25, %v1576_v14  ;;  %v1585_v27 = vmul.f32 0.25, %v1577_v21  ;;  %v1540_v8 = vmul.f32 %v1539_v22, %v3196_v61  ;;  %v1541_v32 = vmul.f32 %v1538_v20, %v3200_v62 }
 0x3be   : > { %v1586_v33 = vadd.f32 %v1584_v25, %v1580_v17  ;;  %v1587_v34 = vadd.f32 %v1585_v27, %v1581_v56  ;;  %v1554_v35 = vadd.f32 %v1552_v55, %v1540_v8  ;;  %v1555_v36 = vadd.f32 %v1553_v26, %v1541_v32 }
 0x3c0   : > { %1640 = vrot.lane.b32.xlu0 %v1587_v34, %s2727_s22  ;;  %1638 = vrot.lane.b32.xlu1 %v1586_v33, %s2727_s22  ;;  %v1578_v37 = vmul.f32 0.25, %v1554_v35  ;;  %v1579_v38 = vmul.f32 0.25, %v1555_v36  ;;  %v1647_v18 = vmul.f32 %v1603_v48, %v1587_v34  ;;  %v1646_v52 = vmul.f32 %v1599_v46, %v1586_v33 }
 0x3c1   : > { %v1659_v19 = vmul.f32 %v1623_v0, %v1587_v34  ;;  %v1658_v6 = vmul.f32 %v1619_v1, %v1586_v33  ;;  %v1665_v3 = vmul.f32 0.75, %v1587_v34  ;;  %v1664_v55 = vmul.f32 0.75, %v1586_v33 }
 0x3c2   : > { %v3485_v39 = vadd.f32 %v1580_v17, %v1578_v37  ;;  %v3487_v40 = vadd.f32 %v1581_v56, %v1579_v38 }
 0x3c4   : > { %1652 = vrot.lane.b32.xlu0 %v1587_v34, %s2728_s24  ;;  %1650 = vrot.lane.b32.xlu1 %v1586_v33, %s2728_s24  ;;  %v1625_v35 = vmul.f32 %v1623_v0, %v3487_v40  ;;  %v1624_v36 = vmul.f32 %v1619_v1, %v3485_v39 }
 0x3c8   : > { %1610 = vrot.lane.b32.xlu0 %v3487_v40, %s2728_s24  ;;  %1608 = vrot.lane.b32.xlu1 %v3485_v39, %s2728_s24 }
 0x3cc   : > { %1590 = vrot.lane.b32.xlu0 %v3487_v40, %s2727_s22  ;;  %1588 = vrot.lane.b32.xlu1 %v3485_v39, %s2727_s22 }
 0x432   : > { %v1641_v43 = vpop.permute.xlu0 %1640  ;;  %v1639_v5 = vpop.permute.xlu1 %1638 }
 0x433   : > { %v1642_v49 = vsel %vm870_vm7, %v1639_v5, %v1641_v43  ;;  %v1643_v47 = vsel %vm870_vm7, %v1641_v43, %v1639_v5 }
 0x434   : > { %v1644_v31 = vmul.f32 %v1643_v47, %v3257_v15  ;;  %v1645_v57 = vmul.f32 %v1642_v49, %v3261_v16 }
 0x436   : > { %v1653_v60 = vpop.permute.xlu0 %1652  ;;  %v1651_v2 = vpop.permute.xlu1 %1650  ;;  %v1648_v51 = vadd.f32 %v1646_v52, %v1644_v31  ;;  %v1649_v54 = vadd.f32 %v1647_v18, %v1645_v57  ;;  %v1631_v31 = vmul.f32 0.75, %v3487_v40  ;;  %v1630_v57 = vmul.f32 0.75, %v3485_v39 }
 0x437   : > { %v1654_v11 = vsel %vm887_vm8, %v1651_v2, %v1653_v60  ;;  %v1655_v53 = vsel %vm887_vm8, %v1653_v60, %v1651_v2 }
 0x438   : > { %v1656_v7 = vmul.f32 %v1654_v11, %v3274_v28  ;;  %v1657_v50 = vmul.f32 %v1655_v53, %v3278_v29  ;;  %v1662_v22 = vmul.f32 0.25, %v1648_v51  ;;  %v1663_v26 = vmul.f32 0.25, %v1649_v54 }
 0x439   : > { %v1605_v11 = vmul.f32 %v1603_v48, %v3487_v40  ;;  %v1604_v53 = vmul.f32 %v1599_v46, %v3485_v39  ;;  %v1769_v46 = vld [vmem:[%s3819_s10] sm:$0xff] }
 0x43a   : > { %v1660_v9 = vadd.f32 %v1658_v6, %v1656_v7  ;;  %v1661_v13 = vadd.f32 %v1659_v19, %v1657_v50  ;;  %v1611_v63 = vpop.permute.xlu0 %1610  ;;  %v1609_v14 = vpop.permute.xlu1 %1608  ;;  %v3529_v33 = vadd.f32 %v1664_v55, %v1662_v22  ;;  %v3531_v34 = vadd.f32 %v1665_v3, %v1663_v26 }
 0x43b   : > { %v1612_v21 = vsel %vm887_vm8, %v1609_v14, %v1611_v63  ;;  %v1613_v17 = vsel %vm887_vm8, %v1611_v63, %v1609_v14 }
 0x43c   : > { %v1668_v56 = vmul.f32 0.25, %v1660_v9  ;;  %v1669_v20 = vmul.f32 0.25, %v1661_v13  ;;  %v1614_v8 = vmul.f32 %v1612_v21, %v3274_v28  ;;  %v1615_v32 = vmul.f32 %v1613_v17, %v3278_v29 }
 0x43e   : > { %v3517_v25 = vadd.f32 %v1668_v56, %v1664_v55  ;;  %v3519_v27 = vadd.f32 %v1669_v20, %v1665_v3  ;;  %v1626_v37 = vadd.f32 %v1624_v36, %v1614_v8  ;;  %v1627_v38 = vadd.f32 %v1625_v35, %v1615_v32  ;;  %v1591_v43 = vpop.permute.xlu0 %1590  ;;  %v1589_v5 = vpop.permute.xlu1 %1588 }
 0x43f   : > { %v1592_v1 = vsel %vm870_vm7, %v1589_v5, %v1591_v43  ;;  %v1593_v0 = vsel %vm870_vm7, %v1591_v43, %v1589_v5 }
 0x440   : > { %1674 = vrot.lane.b32.xlu0 %v3519_v27, %s2720_s19  ;;  %1672 = vrot.lane.b32.xlu1 %v3517_v25, %s2720_s19  ;;  %v1634_v49 = vmul.f32 0.25, %v1626_v37  ;;  %v1635_v47 = vmul.f32 0.25, %v1627_v38  ;;  %v1594_v18 = vmul.f32 %v1593_v0, %v3257_v15  ;;  %v1595_v52 = vmul.f32 %v1592_v1, %v3261_v16  ;;  %s2602_s19 = scalar_lea.vmem %s2601_s14, 512 }
 0x441   : > { %p2604_p7 = scmp.lt.s32.totalorder %s2602_s19, %s2596_s30 }
 0x442   : > { %v3547_v60 = vadd.f32 %v1634_v49, %v1630_v57  ;;  %v3549_v2 = vadd.f32 %v1635_v47, %v1631_v31  ;;  %v1606_v19 = vadd.f32 %v1604_v53, %v1594_v18  ;;  %v1607_v7 = vadd.f32 %v1605_v11, %v1595_v52 }
 0x443   : > { %p2605_p8 = por %p2604_p7, %p2603_p4 }
 0x444   : > { %1682 = vrot.lane.b32.xlu0 %v3531_v34, %s2721_s5  ;;  %1680 = vrot.lane.b32.xlu1 %v3529_v33, %s2721_s5  ;;  %v1628_v50 = vmul.f32 0.25, %v1606_v19  ;;  %v1629_v6 = vmul.f32 0.25, %v1607_v7 }
 0x445   : > { %p2606_p11 = pnand %p2605_p8, %p2599_p3 }
 0x446   : > { %v3567_v39 = vadd.f32 %v1630_v57, %v1628_v50  ;;  %v3569_v40 = vadd.f32 %v1631_v31, %v1629_v6 }
 0x448   : > { %1690 = vrot.lane.b32.xlu0 %v3519_v27, %s2721_s5  ;;  %1688 = vrot.lane.b32.xlu1 %v3517_v25, %s2721_s5  ;;  %v3637_v18 = vpack.c.bf16 %v3549_v2, %v3569_v40  ;;  %v3645_v19 = vpack.c.bf16 %v3547_v60, %v3567_v39 }
 0x44c   : > { %1698 = vrot.lane.b32.xlu0 %v3549_v2, %s2727_s22  ;;  %1696 = vrot.lane.b32.xlu1 %v3547_v60, %s2727_s22 }
 0x450   : > { %1706 = vrot.lane.b32.xlu0 %v3519_v27, %s2727_s22  ;;  %1704 = vrot.lane.b32.xlu1 %v3517_v25, %s2727_s22 }
 0x454   : > { %1714 = vrot.lane.b32.xlu0 %v3531_v34, %s2722_s25  ;;  %1712 = vrot.lane.b32.xlu1 %v3529_v33, %s2722_s25 }
 0x458   : > { %1722 = vrot.lane.b32.xlu0 %v3569_v40, %s2728_s24  ;;  %1720 = vrot.lane.b32.xlu1 %v3567_v39, %s2728_s24 }
 0x45c   : > { %1730 = vrot.lane.b32.xlu0 %v3531_v34, %s2728_s24  ;;  %1728 = vrot.lane.b32.xlu1 %v3529_v33, %s2728_s24  ;;  %s2255_s24 = sshll.u32 %s2842_s4, 8 }
 0x460   : > { %1738 = vrot.lane.b32.xlu0 %v3549_v2, %s2733_s17  ;;  %1736 = vrot.lane.b32.xlu1 %v3547_v60, %s2733_s17 }
 0x464   : > { %1746 = vrot.lane.b32.xlu0 %v3569_v40, %s2734_s18  ;;  %1744 = vrot.lane.b32.xlu1 %v3567_v39, %s2734_s18 }
 0x468   : > { %1754 = vrot.lane.b32.xlu0 %v3549_v2, %s2734_s18  ;;  %1752 = vrot.lane.b32.xlu1 %v3547_v60, %s2734_s18 }
 0x46c   : > { %1762 = vrot.lane.b32.xlu0 %v3569_v40, %s2735_s26  ;;  %1760 = vrot.lane.b32.xlu1 %v3567_v39, %s2735_s26  ;;  %s3742_s26 = scalar_lea.hbm %s3820_s11, %s2255_s24 }
 0x470   : > { %1772 = vperm.xlu1 %2539, %v1769_v46  }
 0x4b2   : > { %v1675_v48 = vpop.permute.xlu0 %1674  ;;  %v1673_v51 = vpop.permute.xlu1 %1672 }
 0x4b3   : > { %v1676_v54 = vsel %vm751_vm0, %v1673_v51, %v1675_v48  ;;  %v1677_v9 = vsel %vm751_vm0, %v1675_v48, %v1673_v51  ;;  %vm1775_vm0 = vcmask 588800  }
 0x4b4   : > { %v1678_v17 = vmul.f32 %v1677_v9, %v3183_v58  ;;  %v1679_v3 = vmul.f32 %v1676_v54, %v3187_v59  ;;  %v3663_v54 = vld [vmem:[%s3818_s9] sm:$0xff] }
 0x4b6   : > { %v1683_v13 = vpop.permute.xlu0 %1682  ;;  %v1681_v63 = vpop.permute.xlu1 %1680 }
 0x4b7   : > { %v1684_v14 = vsel %vm768_vm1, %v1681_v63, %v1683_v13  ;;  %v1685_v21 = vsel %vm768_vm1, %v1683_v13, %v1681_v63 }
 0x4b8   : > { %v1686_v55 = vmul.f32 %v1685_v21, %v3196_v61  ;;  %v1687_v56 = vmul.f32 %v1684_v14, %v3200_v62 }
 0x4ba   : > { %v2355_v20 = vpack.c.bf16 %v1686_v55, %v1678_v17  ;;  %v1691_v22 = vpop.permute.xlu0 %1690  ;;  %v1689_v26 = vpop.permute.xlu1 %1688  ;;  %v2353_v8 = vpack.c.bf16 %v1687_v56, %v1679_v3 }
 0x4bb   : > { %v1692_v32 = vsel %vm768_vm1, %v1689_v26, %v1691_v22  ;;  %v1693_v35 = vsel %vm768_vm1, %v1691_v22, %v1689_v26  ;;  %v2381_v22 = vpack.c.bf16 %v3519_v27, %v3531_v34 }
 0x4bc   : > { %2354 = vmatprep.subr.bf16.mxu1 %v2353_v8  ;;  %v1694_v38 = vmul.f32 %v1693_v35, %v3196_v61  ;;  %v1695_v43 = vmul.f32 %v1692_v32, %v3200_v62  ;;  %v2383_v35 = vpack.c.bf16 %v3517_v25, %v3529_v33 }
 0x4bd   : > { %2356 = vmatpush1.bf16.msra.mxu1 %v2355_v20 }
 0x4be   : > { %v1699_v36 = vpop.permute.xlu0 %1698  ;;  %v1697_v58 = vpop.permute.xlu1 %1696  ;;  %v2369_v9 = vpack.c.bf16 %v1695_v43, %v1687_v56  ;;  %v2371_v13 = vpack.c.bf16 %v1694_v38, %v1686_v55 }
 0x4bf   : > { %v1700_v59 = vsel %vm870_vm7, %v1697_v58, %v1699_v36  ;;  %v1701_v37 = vsel %vm870_vm7, %v1699_v36, %v1697_v58 }
 0x4c0   : > { %v3621_v5 = vmul.f32 %v1701_v37, %v3257_v15  ;;  %v3624_v49 = vmul.f32 %v1700_v59, %v3261_v16 }
 0x4c2   : > { %v2359_v47 = vpack.c.bf16 %v3621_v5, %v1694_v38  ;;  %v1707_v1 = vpop.permute.xlu0 %1706  ;;  %v1705_v0 = vpop.permute.xlu1 %1704  ;;  %v2357_v31 = vpack.c.bf16 %v3624_v49, %v1695_v43  ;;  %v2385_v43 = vpack.c.bf16 %v3569_v40, %v3624_v49 }
 0x4c3   : > { %v1708_v57 = vsel %vm870_vm7, %v1705_v0, %v1707_v1  ;;  %v1709_v61 = vsel %vm870_vm7, %v1707_v1, %v1705_v0 }
 0x4c4   : > { %v3633_v62 = vmul.f32 %v1708_v57, %v3261_v16  ;;  %2358 = vmatprep.subr.bf16.mxu1 %v2357_v31  ;;  %v3641_v53 = vmul.f32 %v1709_v61, %v3257_v15 }
 0x4c5   : > { %2360 = vmatpush1.bf16.msra.mxu1 %v2359_v47  ;;  %v2387_v47 = vpack.c.bf16 %v3567_v39, %v3621_v5 }
 0x4c6   : > { %v1715_v52 = vpop.permute.xlu0 %1714  ;;  %2362 = vmatprep.subr.bf16.mxu1 %v3637_v18  ;;  %v1713_v11 = vpop.permute.xlu1 %1712  ;;  %v2365_v16 = vpack.c.bf16 %v3531_v34, %v3633_v62  ;;  %v2367_v7 = vpack.c.bf16 %v3529_v33, %v3641_v53 }
 0x4c7   : > { %v1716_v50 = vsel %vm785_vm2, %v1713_v11, %v1715_v52  ;;  %v1717_v15 = vsel %vm785_vm2, %v1715_v52, %v1713_v11 }
 0x4c8   : > { %v1719_v48 = vmul.f32 %v1716_v50, %v3221_v24  ;;  %v1718_v63 = vmul.f32 %v1717_v15, %v3217_v23 }
 0x4c9   : > { %2364 = vmatpush1.bf16.msra.mxu1 %v3645_v19 }
 0x4ca   : > { %2366 = vmatprep.subr.bf16.mxu1 %v2365_v16  ;;  %v1723_v6 = vpop.permute.xlu0 %1722  ;;  %v1721_v46 = vpop.permute.xlu1 %1720  ;;  %v2373_v21 = vpack.c.bf16 %v3569_v40, %v1719_v48  ;;  %v2375_v23 = vpack.c.bf16 %v3567_v39, %v1718_v63 }
 0x4cb   : > { %v1725_v51 = vsel %vm887_vm8, %v1723_v6, %v1721_v46  ;;  %v1724_v24 = vsel %vm887_vm8, %v1721_v46, %v1723_v6 }
 0x4cc   : > { %v3670_v14 = vmul.f32 %v1725_v51, %v3278_v29  ;;  %v1726_v17 = vmul.f32 %v1724_v24, %v3274_v28 }
 0x4cd   : > { %2368 = vmatpush1.bf16.msra.mxu1 %v2367_v7 }
 0x4ce   : > { %1795 = vmatprep.subr.mxu1 %v3519_v27  ;;  %v1731_v3 = vpop.permute.xlu0 %1730  ;;  %v1729_v55 = vpop.permute.xlu1 %1728  ;;  %v2377_v56 = vpack.c.bf16 %v3670_v14, %v3549_v2  ;;  %v2379_v20 = vpack.c.bf16 %v1726_v17, %v3547_v60 }
 0x4cf   : > { %v1733_v26 = vsel %vm887_vm8, %v1731_v3, %v1729_v55  ;;  %v1732_v36 = vsel %vm887_vm8, %v1729_v55, %v1731_v3 }
 0x4d0   : > { %v1735_v58 = vmul.f32 %v1733_v26, %v3278_v29  ;;  %v1734_v59 = vmul.f32 %v1732_v36, %v3274_v28  ;;  %v2389_v29 = vpack.c.bf16 %v3633_v62, %v3549_v2  ;;  %v2391_v28 = vpack.c.bf16 %v3641_v53, %v3547_v60 }
 0x4d1   : > { %1796 = vmatpush1.msra.mxu1 %v3517_v25 }
 0x4d2   : > { %2242 = vmatmul.mubr.msk.f32.vlgmr.msra.gmra.mrb[2].mxu1 %vm1775_vm0, %v3663_v54  ;;  %2370 = vmatprep.subr.bf16.mxu1 %v2369_v9  ;;  %v1739_v8 = vpop.permute.xlu0 %1738  ;;  %v1737_v32 = vpop.permute.xlu1 %1736  ;;  %v2409_v16 = vpack.c.bf16 %v1735_v58, %v3519_v27 }
 0x4d3   : > { %2372 = vmatpush1.bf16.msra.mxu1 %v2371_v13  ;;  %1914 = vmatprep.mubr.f32.mxu1 %v2753_v30  ;;  %v1741_v39 = vsel %vm972_vm13, %v1739_v8, %v1737_v32  ;;  %v1740_v2 = vsel %vm972_vm13, %v1737_v32, %v1739_v8 }
 0x4d4   : > { %2374 = vmatprep.subr.bf16.mxu1 %v2373_v21  ;;  %v1743_v49 = vmul.f32 %v1741_v39, %v3317_v42  ;;  %v1742_v61 = vmul.f32 %v1740_v2, %v3313_v41  ;;  %v2405_v41 = vpack.c.bf16 %v3531_v34, %v3670_v14 }
 0x4d6   : > { %v1747_v37 = vpop.permute.xlu0 %1746  ;;  %v1745_v38 = vpop.permute.xlu1 %1744 }
 0x4d7   : > { %2376 = vmatpush1.bf16.msra.mxu1 %v2375_v23  ;;  %v1749_v1 = vsel %vm989_vm14, %v1747_v37, %v1745_v38  ;;  %v1748_v40 = vsel %vm989_vm14, %v1745_v38, %v1747_v37 }
 0x4d8   : > { %2378 = vmatprep.subr.bf16.mxu1 %v2377_v56  ;;  %v1751_v5 = vmul.f32 %v1749_v1, %v3326_v45  ;;  %v1750_v57 = vmul.f32 %v1748_v40, %v3322_v44 }
 0x4da   : > { %v1755_v0 = vpop.permute.xlu0 %1754  ;;  %v1753_v31 = vpop.permute.xlu1 %1752  ;;  %v2397_v60 = vpack.c.bf16 %v1751_v5, %v1743_v49  ;;  %v2399_v52 = vpack.c.bf16 %v1750_v57, %v1742_v61 }
 0x4db   : > { %2380 = vmatpush1.bf16.msra.mxu1 %v2379_v20  ;;  %v1757_v62 = vsel %vm989_vm14, %v1755_v0, %v1753_v31  ;;  %v1756_v11 = vsel %vm989_vm14, %v1753_v31, %v1755_v0 }
 0x4dc   : > { %2382 = vmatprep.subr.bf16.mxu1 %v2381_v22  ;;  %v1759_v53 = vmul.f32 %v1757_v62, %v3326_v45  ;;  %v1758_v42 = vmul.f32 %v1756_v11, %v3322_v44  ;;  %v2407_v45 = vpack.c.bf16 %v3529_v33, %v1726_v17 }
 0x4de   : > { %v1763_v44 = vpop.permute.xlu0 %1762  ;;  %v1761_v7 = vpop.permute.xlu1 %1760  ;;  %v2413_v50 = vpack.c.bf16 %v1759_v53, %v1751_v5 }
 0x4df   : > { %2384 = vmatpush1.bf16.msra.mxu1 %v2383_v35  ;;  %v1765_v34 = vsel %vm1006_vm15, %v1763_v44, %v1761_v7  ;;  %v1764_v27 = vsel %vm1006_vm15, %v1761_v7, %v1763_v44 }
 0x4e0   : > { %1866 = vmatprep.subr.mxu1 %v1735_v58  ;;  %v1767_v33 = vmul.f32 %v1765_v34, %v3351_v12 }
 0x4e3   : > { %1867 = vmatpush1.msra.mxu1 %v1734_v59 }
 0x4e4   : > { %2243 = vmatmul.mubr.msk.f32.vlgmr.msra.gmra.mrb[4].mxu1 %vm1775_vm0, %v3663_v54  ;;  %2386 = vmatprep.subr.bf16.mxu1 %v2385_v43 }
 0x4e5   : > { %2388 = vmatpush1.bf16.msra.mxu1 %v2387_v47  ;;  %1985 = vmatprep.mubr.f32.mxu1 %v2753_v30 }
 0x4e6   : > { %2390 = vmatprep.subr.bf16.mxu1 %v2389_v29 }
 0x4e9   : > { %2392 = vmatpush1.bf16.msra.mxu1 %v2391_v28 }
 0x4ea   : > { %2394 = vmatprep.subr.bf16.mxu1 %v2381_v22 }
 0x4ed   : > { %2396 = vmatpush1.bf16.msra.mxu1 %v2383_v35 }
 0x4ee   : > { %2398 = vmatprep.subr.bf16.mxu1 %v2397_v60 }
 0x4f1   : > { %2400 = vmatpush1.bf16.msra.mxu1 %v2399_v52 }
 0x4f2   : > { %1937 = vmatprep.subr.mxu1 %v1759_v53 }
 0x4f5   : > { %1938 = vmatpush1.msra.mxu1 %v1758_v42 }
 0x4f6   : > { %2244 = vmatmul.mubr.msk.f32.vlgmr.msra.gmra.mrb[6].mxu1 %vm1775_vm0, %v3663_v54  ;;  %2402 = vmatprep.subr.bf16.mxu1 %v3637_v18  ;;  %v2411_v18 = vpack.c.bf16 %v1734_v59, %v3517_v25 }
 0x4f7   : > { %2404 = vmatpush1.bf16.msra.mxu1 %v3645_v19  ;;  %2056 = vmatprep.mubr.f32.mxu1 %v2753_v30  ;;  %v2415_v30 = vpack.c.bf16 %v1758_v42, %v1750_v57  ;;  %v1766_v19 = vmul.f32 %v1764_v27, %v3347_v10 }
 0x4f8   : > { %2406 = vmatprep.subr.bf16.mxu1 %v2405_v41 }
 0x4fb   : > { %2408 = vmatpush1.bf16.msra.mxu1 %v2407_v45 }
 0x4fc   : > { %2410 = vmatprep.subr.bf16.mxu1 %v2409_v16 }
 0x4ff   : > { %2412 = vmatpush1.bf16.msra.mxu1 %v2411_v18 }
 0x500   : > { %2414 = vmatprep.subr.bf16.mxu1 %v2413_v50 }
 0x503   : > { %2416 = vmatpush1.bf16.msra.mxu1 %v2415_v30 }
 0x504   : > { %2008 = vmatprep.subr.mxu1 %v1767_v33 }
 0x507   : > { %2009 = vmatpush1.msra.mxu1 %v1766_v19 }
 0x508   : > { %2245 = vmatmul.mubr.msk.f32.vlgmr.msra.gmra.mrb[8].mxu1 %vm1775_vm0, %v3663_v54 }
 0x509   : > { %2609 = shalt.err (!%p2606_p11)
}
 0x50a   : > { %s2610_s27 = scalar_lea.hbm %s3742_s26, 256  ;;  %s2614_s22 = scalar_lea.hbm %s3820_s11, 512 }
 0x50b   : > { %p2611_p13 = scmp.ne.s32.totalorder %s3742_s26, %s2610_s27  ;;  %p2615_p6 = scmp.lt.u32.totalorder %s3742_s26, %s3820_s11 }
 0x50c   : > { %p2616_p9 = scmp.lt.u32.totalorder %s2614_s22, %s2610_s27  ;;  %p2618_p12 = scmp.lt.u32.totalorder %s2610_s27, %s3742_s26 }
 0x50d   : > { %p2612_p5 = pnand %p2611_p13, %p3842_p1 }
 0x50e   : > { %p2617_p10 = por %p2616_p9, %p2615_p6 }
 0x50f   : > { %p2613_p0 = pneg %p2612_p5 }
 0x510   : > { %p2619_p2 = por %p2618_p12, %p2617_p10 }
 0x512   : > { %p2620_p3 = pnand %p2619_p2, %p2613_p0 }
 0x514   : > { %2623 = shalt.err (!%p2620_p3)
}
 0x515   : > { %2429 = dma.vmem_to_hbm [thread:$0]  (%p3842_p1), %s2100_s15, 256, %s3742_s26, %s2080_s16   ;;  %v1773_v4 = vpop.permute.xlu1 %1772 }
 0x516   : > { %s2235_s18 = sshll.u32 %s3450_s3, 6  ;;  %s2256_s26 = sshll.u32 %s2842_s4, 10 }
 0x517   : > { %s451_s30 = scalar_lea.vmem [#allocation11], %s2235_s18  ;;  %s3768_s14 = scalar_lea.hbm %s3821_s12, %s2256_s26 }
 0x518   : > { %s2113_s15 = sshll.u32 %s451_s30, 4  ;;  %s2085_s19 = scalar_lea.sflag [#allocation12], %s3450_s3  ;;  %s3770_s15 = int_to_ptr.vmem [resolvable:$true] %s2113_s15 }
 0x519   : > { %s2624_s27 = scalar_lea.vmem %s3770_s15, 1024  ;;  %s2755_s4 = smov [#allocation11]  }
 0x51a   : > { %p2625_p4 = scmp.ne.s32.totalorder %s3770_s15, %s2624_s27  ;;  %s2628_s5 = sshll.u32 %s2755_s4, 4  ;;  %s2629_s5 = int_to_ptr.vmem [resolvable:$false] %s2628_s5 }
 0x51b   : > { %s2630_s25 = scalar_lea.vmem %s2629_s5, 2048  ;;  %p2631_p11 = scmp.lt.s32.totalorder %s3770_s15, %s2629_s5 }
 0x51c   : > { %p2626_p7 = pnand %p2625_p4, %p3842_p1  ;;  %p2632_p13 = scmp.lt.s32.totalorder %s2630_s25, %s2624_s27 }
 0x51e   : > { %p2627_p8 = pneg %p2626_p7  ;;  %p2633_p5 = por %p2632_p13, %p2631_p11 }
 0x520   : > { %p2634_p0 = pnand %p2633_p5, %p2627_p8 }
 0x5a5   : > { %v1845_v10 = vpop.f32.mrb[2].mxu1 }
 0x5a6   : > { %v1846_v12 = vadd.f32 %v1845_v10, %v1773_v4  ;;  %v1847_v25 = vpop.f32.mrb[3].mxu1 }
 0x5a7   : > { %v1848_v6 = vadd.f32 %v1847_v25, %v1773_v4 }
 0x5a8   : > { %v2063_v46 = vmax.f32 %v1846_v12, 0.0 }
 0x5a9   : > { %v2064_v15 = vmax.f32 %v1848_v6, 0.0 }
 0x5aa   : > { %2071 = vst [vmem:[%s451_s30] sm:$0xff] %v2063_v46 }
 0x5ab   : > { %2072 = vst [vmem:[%s451_s30 + $0x8] sm:$0xff] %v2064_v15 }
 0x5b7   : > { %v1916_v48 = vpop.f32.mrb[4].mxu1 }
 0x5b8   : > { %v1917_v51 = vadd.f32 %v1916_v48, %v1773_v4  ;;  %v1918_v54 = vpop.f32.mrb[5].mxu1 }
 0x5b9   : > { %v1919_v9 = vadd.f32 %v1918_v54, %v1773_v4 }
 0x5ba   : > { %v2065_v13 = vmax.f32 %v1917_v51, 0.0 }
 0x5bb   : > { %v2066_v63 = vmax.f32 %v1919_v9, 0.0 }
 0x5bc   : > { %2073 = vst [vmem:[%s451_s30 + $0x10] sm:$0xff] %v2065_v13 }
 0x5bd   : > { %2074 = vst [vmem:[%s451_s30 + $0x18] sm:$0xff] %v2066_v63 }
 0x5c9   : > { %v1987_v24 = vpop.f32.mrb[6].mxu1 }
 0x5ca   : > { %v1988_v14 = vadd.f32 %v1987_v24, %v1773_v4  ;;  %v1989_v21 = vpop.f32.mrb[7].mxu1 }
 0x5cb   : > { %v1990_v23 = vadd.f32 %v1989_v21, %v1773_v4 }
 0x5cc   : > { %v2067_v17 = vmax.f32 %v1988_v14, 0.0 }
 0x5cd   : > { %v2068_v3 = vmax.f32 %v1990_v23, 0.0 }
 0x5ce   : > { %2075 = vst [vmem:[%s451_s30 + $0x20] sm:$0xff] %v2067_v17 }
 0x5cf   : > { %2076 = vst [vmem:[%s451_s30 + $0x28] sm:$0xff] %v2068_v3 }
 0x5db   : > { %v2058_v55 = vpop.f32.mrb[8].mxu1 }
 0x5dc   : > { %v2059_v56 = vadd.f32 %v2058_v55, %v1773_v4  ;;  %v2060_v20 = vpop.f32.mrb[9].mxu1 }
 0x5dd   : > { %v2061_v22 = vadd.f32 %v2060_v20, %v1773_v4 }
 0x5de   : > { %v2069_v26 = vmax.f32 %v2059_v56, 0.0 }
 0x5df   : > { %v2070_v8 = vmax.f32 %v2061_v22, 0.0 }
 0x5e0   : > { %2077 = vst [vmem:[%s451_s30 + $0x30] sm:$0xff] %v2069_v26 }
 0x5e1   : > { %2078 = vst [vmem:[%s451_s30 + $0x38] sm:$0xff] %v2070_v8 }
 0x5e2   : > { %2637 = shalt.err (!%p2634_p0)
}
 0x5e3   : > { %s2638_s3 = scalar_lea.hbm %s3768_s14, 1024  ;;  %s2642_s17 = scalar_lea.hbm %s3821_s12, 2048 }
 0x5e4   : > { %p2639_p6 = scmp.ne.s32.totalorder %s3768_s14, %s2638_s3  ;;  %p2643_p12 = scmp.lt.u32.totalorder %s3768_s14, %s3821_s12 }
 0x5e5   : > { %p2644_p2 = scmp.lt.u32.totalorder %s2642_s17, %s2638_s3  ;;  %p2646_p4 = scmp.lt.u32.totalorder %s2638_s3, %s3768_s14 }
 0x5e6   : > { %p2640_p9 = pnand %p2639_p6, %p3842_p1 }
 0x5e7   : > { %p2645_p3 = por %p2644_p2, %p2643_p12 }
 0x5e8   : > { %p2641_p10 = pneg %p2640_p9 }
 0x5e9   : > { %p2647_p7 = por %p2646_p4, %p2645_p3 }
 0x5eb   : > { %p2648_p8 = pnand %p2647_p7, %p2641_p10 }
 0x5ed   : > { %2651 = shalt.err (!%p2648_p8)
}
 0x5ee   : > { %2430 = dma.vmem_to_hbm [thread:$0]  (%p3842_p1), %s3770_s15, 1024, %s3768_s14, %s2085_s19  }
 0x5ef PF: > { %p2451_p11 = scmp.ge.s32.totalorder %s2698_s23, 2  ;;  %s2125_s26 = sand.u32 1, %s2686_s20  }
 0x5f0   : > { %p3843_p13 = scmp.ne.s32.totalorder %s3834_s29, 0  ;;  %s2126_s16 = scalar_lea.sflag [#allocation7], %s2125_s26 }
 0x5f2   : > { %p2441_p5 = pnand %p2451_p11, %p3843_p13 }
 0x5f4   : > { %2677 = dma.done.wait (!%p2441_p5), %s2126_s16, 256  }
 0x5f5   : > { %2679 = vsyncadd (!%p2441_p5), %s2126_s16, 4294967040  ;;  %s2135_s13 = scalar_lea.sflag [#allocation12], %s2125_s26 }
 0x5f6   : > { %2681 = dma.done.wait (!%p2441_p5), %s2135_s13, 1024  }
 0x5f7   : > { %2683 = vsyncadd (!%p2441_p5), %s2135_s13, 4294966272  ;;  %s3844_s23 = sld [smem:[#allocation18_spill]]  ;;  %s3845_s28 = sld [smem:[#allocation17_spill]] }
 0x5f8   : > { %s3846_s22 = sld [smem:[#allocation19_spill]]  ;;  %s3847_s20 = smov %s2690_s21 }
 0x5fd   : > { %p34_p1 = scmp.ge.s32.totalorder %s3844_s23, 4   ;;  %s3848_s21 = smov %s3845_s28 }
 0x5ff   :  { %36 = sbr.rel (!%p34_p1) target bundleno = 7 (0x7), region = 125 }
 0x606   :  { %2140 = vsyncpa [#allocation6], 1 }
 0x607   :  { %2142 = vsyncpa [#allocation6 + $0x1], 1 }
 0x608   :  { %2143 = vsyncpa [#allocation9], 1 }
 0x609   :  { %2144 = vsyncpa [#allocation7], 1 }
 0x60a   :  { %2146 = vsyncpa [#allocation7 + $0x1], 1 }
 0x60b   :  { %2147 = vsyncpa [#allocation12], 1 }
 0x60c   :  { %2149 = vsyncpa [#allocation12 + $0x1], 1 }

</bundles_post_ra>
